<compile_context>
chip_gen: v7x
topology: tpu7x:2x2x1
jax: 0.10.0
libtpu: 0.0.40
codegen_flags: <defaults>
</compile_context>

<pallas_src>
from functools import partial

import numpy as np
import jax
import jax.numpy as jnp
from jax.experimental import pallas as pl
from jax.experimental.pallas import tpu as pltpu


# ----------------------------------------------------------------------------
# Pallas kernel: kNN indices + EdgePooling edge scores, fully fused
# ----------------------------------------------------------------------------
def _knn_edge_kernel(x_ref, w_ref, b_ref, nbr_ref, score_ref):
    B, N, D = x_ref.shape
    K = nbr_ref.shape[-1]

    x = x_ref[...]                                            # [B, N, D] f32

    # ---- all-pairs ranking metric via one bf16 MXU Gram per batch ----------
    # Distances are only used for top-k ranking, so bf16 operands (f32
    # accumulate) are fine.
    xb = x.astype(jnp.bfloat16)
    g = jax.lax.dot_general(
        xb, xb,
        dimension_numbers=(((2,), (2,)), ((0,), (0,))),
        preferred_element_type=jnp.float32)                   # [B,N,N] x_i.x_j
    sq = jnp.sum(x * x, axis=-1)                              # [B, N] ||x_j||^2
    # ||x_i - x_j||^2 minus the per-row constant ||x_i||^2 (ranking-equivalent,
    # saves one broadcast+add on the VPU).  NOT a true distance.
    d = sq[:, None, :] - 2.0 * g                              # [B, N, N]

    # ---- EdgePooling linear projection, fused (x already in VMEM) ----------
    w = w_ref[...]                                            # [2, D]
    w_src = w[0:1, :].reshape(1, 1, D)
    w_dst = w[1:2, :].reshape(1, 1, D)
    s_src = jnp.sum(x * w_src, axis=-1)                       # [B, N]
    s_dst = jnp.sum(x * w_dst, axis=-1)                       # [B, N]
    bias = b_ref[0, 0]                                        # scalar (SMEM)

    # ---- in-kernel top-k: K masked argmin sweeps (no [B,N,N] HBM writeback) -
    iota_j = jax.lax.broadcasted_iota(jnp.int32, (B, N, N), 2)
    s_src_b = s_src[:, None, :]                               # [B, 1, N]
    nbr_cols, ssrc_cols = [], []
    for _ in range(K):                                        # K is tiny/static
        mn = jnp.min(d, axis=-1, keepdims=True)               # [B, N, 1]
        # lowest index among ties (matches lax.top_k tie-breaking)
        idx = jnp.min(jnp.where(d == mn, iota_j, N), axis=-1)  # [B, N] int32
        sel = iota_j == idx[:, :, None]                       # [B, N, N] one-hot
        nbr_cols.append(idx)
        # gather s_src at the selected neighbour via the one-hot mask
        ssrc_cols.append(jnp.sum(jnp.where(sel, s_src_b, 0.0), axis=-1))
        d = jnp.where(sel, jnp.inf, d)                        # knock out chosen
    nbr = jnp.stack(nbr_cols, axis=-1)                        # [B, N, K] int32
    s_src_g = jnp.stack(ssrc_cols, axis=-1)                   # [B, N, K] f32

    # ---- edge scores: softmax over the K edges of each target node, + 0.5 --
    raw = s_src_g + s_dst[:, :, None] + bias                  # [B, N, K]
    m = jnp.max(raw, axis=-1, keepdims=True)
    e = jnp.exp(raw - m)
    p = e / jnp.sum(e, axis=-1, keepdims=True)
    nbr_ref[...] = nbr
    score_ref[...] = p + 0.5                                  # add_to_edge_score


@partial(jax.jit, static_argnames=("knn_k",))
def _device_forward(x, lin_w, lin_b, knn_k):
    """Single jitted dispatch: one pallas_call, whole arrays resident in VMEM."""
    B, N, D = x.shape
    x = x.astype(jnp.float32)
    # Linear(2D, 1) split into source / target halves -> [2, D]
    wt = jnp.stack([lin_w[0, :D], lin_w[0, D:]], axis=0).astype(jnp.float32)
    bias = jnp.reshape(lin_b.astype(jnp.float32), (1, 1))
    nbr, score = pl.pallas_call(
        _knn_edge_kernel,
        out_shape=(jax.ShapeDtypeStruct((B, N, knn_k), jnp.int32),
                   jax.ShapeDtypeStruct((B, N, knn_k), jnp.float32)),
        in_specs=[pl.BlockSpec(memory_space=pltpu.MemorySpace.VMEM),
                  pl.BlockSpec(memory_space=pltpu.MemorySpace.VMEM),
                  pl.BlockSpec(memory_space=pltpu.MemorySpace.SMEM)],
        out_specs=(pl.BlockSpec(memory_space=pltpu.MemorySpace.VMEM),
                   pl.BlockSpec(memory_space=pltpu.MemorySpace.VMEM)),
    )(x, wt, bias)
    return nbr, score, x


# ----------------------------------------------------------------------------
# Host-side EdgePooling merge (sequential, data-dependent greedy matching;
# torch_geometric runs this part on CPU with Python loops as well).
# ----------------------------------------------------------------------------
# TODO(synk): greedy edge contraction + dynamic-size cluster outputs have no
# clean static-shape Pallas equivalent; done on host to preserve semantics.
def _merge_edges(x_np, src, dst, score):
    n = x_np.shape[0]
    order = np.argsort(-score, kind="stable")
    cluster = np.full(n, -1, dtype=np.int64)
    remaining = np.ones(n, dtype=bool)
    contracted_scores = []
    i = 0
    for e in order:
        s = int(src[e]); t = int(dst[e])
        if not remaining[s]:
            continue
        if not remaining[t]:
            continue
        cluster[s] = i
        remaining[s] = False
        if s != t:
            cluster[t] = i
            remaining[t] = False
        contracted_scores.append(float(score[e]))
        i += 1
    n_contracted = i
    for node in range(n):
        if remaining[node]:
            cluster[node] = i
            i += 1
    num_clusters = i

    new_x = np.zeros((num_clusters, x_np.shape[1]), dtype=x_np.dtype)
    np.add.at(new_x, cluster, x_np)
    new_score = np.ones(num_clusters, dtype=x_np.dtype)
    if n_contracted > 0:
        new_score[:n_contracted] = np.asarray(contracted_scores, dtype=x_np.dtype)
    new_x = new_x * new_score[:, None]

    # coalesce(cluster[edge_index]): unique (row, col) pairs, row-major sorted
    cs = cluster[src]
    ct = cluster[dst]
    pairs = np.unique(np.stack([cs, ct], axis=1), axis=0)
    new_edge_index = pairs.T.astype(np.int64)
    return new_x, new_edge_index, num_clusters


def _get_batched_data(x_list, ei_list):
    counts = [x.shape[0] for x in x_list]
    offsets = np.cumsum([0] + counts[:-1])
    batch_x = np.concatenate(x_list, axis=0)
    batch_ei = np.concatenate(
        [ei + off for ei, off in zip(ei_list, offsets)], axis=1)
    return batch_x, batch_ei


# ----------------------------------------------------------------------------
# GraphPooling forward
# ----------------------------------------------------------------------------
def graph_pooling_forward(x, lin_w, lin_b, knn_k):
    """
    x:      [B, N, D] float32
    lin_w:  [1, 2*D]  (EdgePooling.lin weight)
    lin_b:  scalar    (EdgePooling.lin bias)
    returns (batch_x, batch_edge_index, batch_idx)
    """
    B, N, D = x.shape

    # --- one jitted dispatch: fused Pallas kernel does dist/top-k/proj/softmax
    nbr, score, x_dev = _device_forward(x, lin_w, lin_b, knn_k)

    # Single device->host transfer for everything the host merge needs.
    nbr_np, score_np, x_np = jax.device_get((nbr, score, x_dev))
    nbr_np = np.asarray(nbr_np)
    score_np = np.asarray(score_np)
    x_np = np.asarray(x_np, dtype=np.float32)

    x_list, ei_list, bidx_list = [], [], []
    for i in range(B):
        src = nbr_np[i].reshape(-1)                 # edge sources (neighbours)
        dst = np.repeat(np.arange(N), knn_k)        # edge targets (query nodes)
        sc = score_np[i].reshape(-1)
        new_x, new_ei, n_clusters = _merge_edges(x_np[i], src, dst, sc)
        x_list.append(new_x)
        ei_list.append(new_ei)
        bidx_list.append(np.full(n_clusters, i, dtype=np.int64))

    batch_x_np, batch_ei_np = _get_batched_data(x_list, ei_list)
    batch_idx_np = np.concatenate(bidx_list)

    return (jnp.asarray(batch_x_np),
            jnp.asarray(batch_ei_np),
            jnp.asarray(batch_idx_np))


# ----------------------------------------------------------------------------
if __name__ == "__main__":
    B, N, D = 2, 16, 32      # batch, n_nodes, d_model
    KNN_K = 4

    key = jax.random.PRNGKey(0)
    kx, kw, kb = jax.random.split(key, 3)
    x = jax.random.normal(kx, (B, N, D), dtype=jnp.float32)
    # EdgePooling.lin = nn.Linear(2*d_model, 1): weight [1, 2D], bias scalar
    lin_w = jax.random.normal(kw, (1, 2 * D), dtype=jnp.float32) * 0.1
    lin_b = jax.random.normal(kb, (), dtype=jnp.float32) * 0.1

    batch_x, batch_edge_index, batch_idx = graph_pooling_forward(
        x, lin_w, lin_b, KNN_K)

    jax.block_until_ready(batch_x)
    jax.block_until_ready(batch_edge_index)
    jax.block_until_ready(batch_idx)

    assert batch_x.ndim == 2 and batch_x.shape[1] == D
    assert batch_edge_index.shape[0] == 2
    assert batch_idx.shape[0] == batch_x.shape[0]

    print("KERNEL_OK")
</pallas_src>

<mosaic_0001>
module attributes {stable_mosaic.version = 11 : i64} {
  func.func @_knn_edge_kernel(%arg0: memref<2x16x32xf32, #tpu.memory_space<vmem>>, %arg1: memref<2x32xf32, #tpu.memory_space<vmem>>, %arg2: memref<1x1xf32, #tpu.memory_space<smem>>, %arg3: memref<2x16x4xi32, #tpu.memory_space<vmem>>, %arg4: memref<2x16x4xf32, #tpu.memory_space<vmem>>) attributes {dimension_semantics = [], scalar_prefetch = 0 : i64, scratch_operands = 0 : i64, tpu.core_type = #tpu.core_type<tc>} {
    %c0 = arith.constant 0 : index
    %c0_0 = arith.constant 0 : index
    %c0_1 = arith.constant 0 : index
    %0 = vector.load %arg0[%c0, %c0_0, %c0_1] : memref<2x16x32xf32, #tpu.memory_space<vmem>>, vector<2x16x32xf32>
    %1 = arith.truncf %0 : vector<2x16x32xf32> to vector<2x16x32xbf16>
    %cst = arith.constant dense<0.000000e+00> : vector<2x16x16xf32>
    %2 = tpu.matmul %1, %1, %cst {dimension_numbers = #tpu.dot_dimension_numbers<[2], [2], [1], [1], [0, 0, 0, 1, 1, 1], [0], [0]>} : vector<2x16x32xbf16>, vector<2x16x32xbf16>, vector<2x16x16xf32> -> vector<2x16x16xf32>
    %3 = arith.mulf %0, %0 : vector<2x16x32xf32>
    %cst_2 = arith.constant dense<0.000000e+00> : vector<2x16xf32>
    %4 = vector.multi_reduction <add>, %3, %cst_2 [2] : vector<2x16x32xf32> to vector<2x16xf32>
    %5 = vector.shape_cast %4 : vector<2x16xf32> to vector<2x1x16xf32>
    %cst_3 = arith.constant 2.000000e+00 : f32
    %6 = vector.broadcast %cst_3 : f32 to vector<2x16x16xf32>
    %7 = arith.mulf %6, %2 : vector<2x16x16xf32>
    %8 = vector.broadcast %5 : vector<2x1x16xf32> to vector<2x16x16xf32>
    %9 = arith.subf %8, %7 : vector<2x16x16xf32>
    %c0_4 = arith.constant 0 : index
    %c0_5 = arith.constant 0 : index
    %10 = vector.load %arg1[%c0_4, %c0_5] : memref<2x32xf32, #tpu.memory_space<vmem>>, vector<2x32xf32>
    %11 = vector.extract_strided_slice %10 {offsets = [0, 0], sizes = [1, 32], strides = [1, 1]} : vector<2x32xf32> to vector<1x32xf32>
    %12 = vector.shape_cast %11 : vector<1x32xf32> to vector<1x1x32xf32>
    %13 = vector.extract_strided_slice %10 {offsets = [1, 0], sizes = [1, 32], strides = [1, 1]} : vector<2x32xf32> to vector<1x32xf32>
    %14 = vector.shape_cast %13 : vector<1x32xf32> to vector<1x1x32xf32>
    %15 = vector.broadcast %12 : vector<1x1x32xf32> to vector<2x16x32xf32>
    %16 = arith.mulf %0, %15 : vector<2x16x32xf32>
    %cst_6 = arith.constant dense<0.000000e+00> : vector<2x16xf32>
    %17 = vector.multi_reduction <add>, %16, %cst_6 [2] : vector<2x16x32xf32> to vector<2x16xf32>
    %18 = vector.broadcast %14 : vector<1x1x32xf32> to vector<2x16x32xf32>
    %19 = arith.mulf %0, %18 : vector<2x16x32xf32>
    %cst_7 = arith.constant dense<0.000000e+00> : vector<2x16xf32>
    %20 = vector.multi_reduction <add>, %19, %cst_7 [2] : vector<2x16x32xf32> to vector<2x16xf32>
    %c0_8 = arith.constant 0 : index
    %c0_9 = arith.constant 0 : index
    %21 = memref.load %arg2[%c0_8, %c0_9] : memref<1x1xf32, #tpu.memory_space<smem>>
    %22 = tpu.iota {dimensions = array<i32: 2>} : vector<2x16x16xi32>
    %23 = vector.shape_cast %17 : vector<2x16xf32> to vector<2x1x16xf32>
    %cst_10 = arith.constant dense<0x7F800000> : vector<2x16xf32>
    %24 = vector.multi_reduction <minimumf>, %9, %cst_10 [2] : vector<2x16x16xf32> to vector<2x16xf32>
    %25 = vector.shape_cast %24 : vector<2x16xf32> to vector<2x16x1xf32>
    %26 = vector.broadcast %25 : vector<2x16x1xf32> to vector<2x16x16xf32>
    %27 = arith.cmpf oeq, %9, %26 : vector<2x16x16xf32>
    %c16_i32 = arith.constant 16 : i32
    %28 = vector.broadcast %c16_i32 : i32 to vector<2x16x16xi32>
    %29 = arith.select %27, %22, %28 : vector<2x16x16xi1>, vector<2x16x16xi32>
    %cst_11 = arith.constant dense<2147483647> : vector<2x16xi32>
    %30 = vector.multi_reduction <minsi>, %29, %cst_11 [2] : vector<2x16x16xi32> to vector<2x16xi32>
    %31 = vector.shape_cast %30 : vector<2x16xi32> to vector<2x16x1xi32>
    %32 = vector.broadcast %31 : vector<2x16x1xi32> to vector<2x16x16xi32>
    %33 = arith.cmpi eq, %22, %32 : vector<2x16x16xi32>
    %cst_12 = arith.constant 0.000000e+00 : f32
    %34 = vector.shape_cast %23 : vector<2x1x16xf32> to vector<2x1x16xf32>
    %35 = vector.broadcast %34 : vector<2x1x16xf32> to vector<2x16x16xf32>
    %36 = vector.broadcast %cst_12 : f32 to vector<2x16x16xf32>
    %37 = arith.select %33, %35, %36 : vector<2x16x16xi1>, vector<2x16x16xf32>
    %cst_13 = arith.constant dense<0.000000e+00> : vector<2x16xf32>
    %38 = vector.multi_reduction <add>, %37, %cst_13 [2] : vector<2x16x16xf32> to vector<2x16xf32>
    %cst_14 = arith.constant 0x7F800000 : f32
    %39 = vector.broadcast %cst_14 : f32 to vector<2x16x16xf32>
    %40 = arith.select %33, %39, %9 : vector<2x16x16xi1>, vector<2x16x16xf32>
    %cst_15 = arith.constant dense<0x7F800000> : vector<2x16xf32>
    %41 = vector.multi_reduction <minimumf>, %40, %cst_15 [2] : vector<2x16x16xf32> to vector<2x16xf32>
    %42 = vector.shape_cast %41 : vector<2x16xf32> to vector<2x16x1xf32>
    %43 = vector.broadcast %42 : vector<2x16x1xf32> to vector<2x16x16xf32>
    %44 = arith.cmpf oeq, %40, %43 : vector<2x16x16xf32>
    %c16_i32_16 = arith.constant 16 : i32
    %45 = vector.broadcast %c16_i32_16 : i32 to vector<2x16x16xi32>
    %46 = arith.select %44, %22, %45 : vector<2x16x16xi1>, vector<2x16x16xi32>
    %cst_17 = arith.constant dense<2147483647> : vector<2x16xi32>
    %47 = vector.multi_reduction <minsi>, %46, %cst_17 [2] : vector<2x16x16xi32> to vector<2x16xi32>
    %48 = vector.shape_cast %47 : vector<2x16xi32> to vector<2x16x1xi32>
    %49 = vector.broadcast %48 : vector<2x16x1xi32> to vector<2x16x16xi32>
    %50 = arith.cmpi eq, %22, %49 : vector<2x16x16xi32>
    %cst_18 = arith.constant 0.000000e+00 : f32
    %51 = vector.shape_cast %23 : vector<2x1x16xf32> to vector<2x1x16xf32>
    %52 = vector.broadcast %51 : vector<2x1x16xf32> to vector<2x16x16xf32>
    %53 = vector.broadcast %cst_18 : f32 to vector<2x16x16xf32>
    %54 = arith.select %50, %52, %53 : vector<2x16x16xi1>, vector<2x16x16xf32>
    %cst_19 = arith.constant dense<0.000000e+00> : vector<2x16xf32>
    %55 = vector.multi_reduction <add>, %54, %cst_19 [2] : vector<2x16x16xf32> to vector<2x16xf32>
    %cst_20 = arith.constant 0x7F800000 : f32
    %56 = vector.broadcast %cst_20 : f32 to vector<2x16x16xf32>
    %57 = arith.select %50, %56, %40 : vector<2x16x16xi1>, vector<2x16x16xf32>
    %cst_21 = arith.constant dense<0x7F800000> : vector<2x16xf32>
    %58 = vector.multi_reduction <minimumf>, %57, %cst_21 [2] : vector<2x16x16xf32> to vector<2x16xf32>
    %59 = vector.shape_cast %58 : vector<2x16xf32> to vector<2x16x1xf32>
    %60 = vector.broadcast %59 : vector<2x16x1xf32> to vector<2x16x16xf32>
    %61 = arith.cmpf oeq, %57, %60 : vector<2x16x16xf32>
    %c16_i32_22 = arith.constant 16 : i32
    %62 = vector.broadcast %c16_i32_22 : i32 to vector<2x16x16xi32>
    %63 = arith.select %61, %22, %62 : vector<2x16x16xi1>, vector<2x16x16xi32>
    %cst_23 = arith.constant dense<2147483647> : vector<2x16xi32>
    %64 = vector.multi_reduction <minsi>, %63, %cst_23 [2] : vector<2x16x16xi32> to vector<2x16xi32>
    %65 = vector.shape_cast %64 : vector<2x16xi32> to vector<2x16x1xi32>
    %66 = vector.broadcast %65 : vector<2x16x1xi32> to vector<2x16x16xi32>
    %67 = arith.cmpi eq, %22, %66 : vector<2x16x16xi32>
    %cst_24 = arith.constant 0.000000e+00 : f32
    %68 = vector.shape_cast %23 : vector<2x1x16xf32> to vector<2x1x16xf32>
    %69 = vector.broadcast %68 : vector<2x1x16xf32> to vector<2x16x16xf32>
    %70 = vector.broadcast %cst_24 : f32 to vector<2x16x16xf32>
    %71 = arith.select %67, %69, %70 : vector<2x16x16xi1>, vector<2x16x16xf32>
    %cst_25 = arith.constant dense<0.000000e+00> : vector<2x16xf32>
    %72 = vector.multi_reduction <add>, %71, %cst_25 [2] : vector<2x16x16xf32> to vector<2x16xf32>
    %cst_26 = arith.constant 0x7F800000 : f32
    %73 = vector.broadcast %cst_26 : f32 to vector<2x16x16xf32>
    %74 = arith.select %67, %73, %57 : vector<2x16x16xi1>, vector<2x16x16xf32>
    %cst_27 = arith.constant dense<0x7F800000> : vector<2x16xf32>
    %75 = vector.multi_reduction <minimumf>, %74, %cst_27 [2] : vector<2x16x16xf32> to vector<2x16xf32>
    %76 = vector.shape_cast %75 : vector<2x16xf32> to vector<2x16x1xf32>
    %77 = vector.broadcast %76 : vector<2x16x1xf32> to vector<2x16x16xf32>
    %78 = arith.cmpf oeq, %74, %77 : vector<2x16x16xf32>
    %c16_i32_28 = arith.constant 16 : i32
    %79 = vector.broadcast %c16_i32_28 : i32 to vector<2x16x16xi32>
    %80 = arith.select %78, %22, %79 : vector<2x16x16xi1>, vector<2x16x16xi32>
    %cst_29 = arith.constant dense<2147483647> : vector<2x16xi32>
    %81 = vector.multi_reduction <minsi>, %80, %cst_29 [2] : vector<2x16x16xi32> to vector<2x16xi32>
    %82 = vector.shape_cast %81 : vector<2x16xi32> to vector<2x16x1xi32>
    %83 = vector.broadcast %82 : vector<2x16x1xi32> to vector<2x16x16xi32>
    %84 = arith.cmpi eq, %22, %83 : vector<2x16x16xi32>
    %cst_30 = arith.constant 0.000000e+00 : f32
    %85 = vector.shape_cast %23 : vector<2x1x16xf32> to vector<2x1x16xf32>
    %86 = vector.broadcast %85 : vector<2x1x16xf32> to vector<2x16x16xf32>
    %87 = vector.broadcast %cst_30 : f32 to vector<2x16x16xf32>
    %88 = arith.select %84, %86, %87 : vector<2x16x16xi1>, vector<2x16x16xf32>
    %cst_31 = arith.constant dense<0.000000e+00> : vector<2x16xf32>
    %89 = vector.multi_reduction <add>, %88, %cst_31 [2] : vector<2x16x16xf32> to vector<2x16xf32>
    %90 = vector.shape_cast %30 : vector<2x16xi32> to vector<2x16x1xi32>
    %91 = vector.shape_cast %47 : vector<2x16xi32> to vector<2x16x1xi32>
    %92 = vector.shape_cast %64 : vector<2x16xi32> to vector<2x16x1xi32>
    %93 = vector.shape_cast %81 : vector<2x16xi32> to vector<2x16x1xi32>
    %94 = tpu.concatenate %90, %91, %92, %93 in 2 : vector<2x16x1xi32>, vector<2x16x1xi32>, vector<2x16x1xi32>, vector<2x16x1xi32> -> vector<2x16x4xi32>
    %95 = vector.shape_cast %38 : vector<2x16xf32> to vector<2x16x1xf32>
    %96 = vector.shape_cast %55 : vector<2x16xf32> to vector<2x16x1xf32>
    %97 = vector.shape_cast %72 : vector<2x16xf32> to vector<2x16x1xf32>
    %98 = vector.shape_cast %89 : vector<2x16xf32> to vector<2x16x1xf32>
    %99 = tpu.concatenate %95, %96, %97, %98 in 2 : vector<2x16x1xf32>, vector<2x16x1xf32>, vector<2x16x1xf32>, vector<2x16x1xf32> -> vector<2x16x4xf32>
    %100 = vector.shape_cast %20 : vector<2x16xf32> to vector<2x16x1xf32>
    %101 = vector.broadcast %100 : vector<2x16x1xf32> to vector<2x16x4xf32>
    %102 = arith.addf %99, %101 : vector<2x16x4xf32>
    %103 = vector.broadcast %21 : f32 to vector<2x16x4xf32>
    %104 = arith.addf %102, %103 : vector<2x16x4xf32>
    %cst_32 = arith.constant dense<0xFF800000> : vector<2x16xf32>
    %105 = vector.multi_reduction <maximumf>, %104, %cst_32 [2] : vector<2x16x4xf32> to vector<2x16xf32>
    %106 = vector.shape_cast %105 : vector<2x16xf32> to vector<2x16x1xf32>
    %107 = vector.broadcast %106 : vector<2x16x1xf32> to vector<2x16x4xf32>
    %108 = arith.subf %104, %107 : vector<2x16x4xf32>
    %109 = math.exp %108 : vector<2x16x4xf32>
    %cst_33 = arith.constant dense<0.000000e+00> : vector<2x16xf32>
    %110 = vector.multi_reduction <add>, %109, %cst_33 [2] : vector<2x16x4xf32> to vector<2x16xf32>
    %111 = vector.shape_cast %110 : vector<2x16xf32> to vector<2x16x1xf32>
    %112 = vector.broadcast %111 : vector<2x16x1xf32> to vector<2x16x4xf32>
    %113 = arith.divf %109, %112 : vector<2x16x4xf32>
    %c0_34 = arith.constant 0 : index
    %c0_35 = arith.constant 0 : index
    %c0_36 = arith.constant 0 : index
    %114 = vector.load %arg3[%c0_34, %c0_35, %c0_36] : memref<2x16x4xi32, #tpu.memory_space<vmem>>, vector<2x16x4xi32>
    tpu.vector_store %arg3[%c0_34, %c0_35, %c0_36], %94 {strides = array<i32>} : memref<2x16x4xi32, #tpu.memory_space<vmem>>, vector<2x16x4xi32>,
    %cst_37 = arith.constant 5.000000e-01 : f32
    %115 = vector.broadcast %cst_37 : f32 to vector<2x16x4xf32>
    %116 = arith.addf %113, %115 : vector<2x16x4xf32>
    %c0_38 = arith.constant 0 : index
    %c0_39 = arith.constant 0 : index
    %c0_40 = arith.constant 0 : index
    %117 = vector.load %arg4[%c0_38, %c0_39, %c0_40] : memref<2x16x4xf32, #tpu.memory_space<vmem>>, vector<2x16x4xf32>
    tpu.vector_store %arg4[%c0_38, %c0_39, %c0_40], %116 {strides = array<i32>} : memref<2x16x4xf32, #tpu.memory_space<vmem>>, vector<2x16x4xf32>,
    return
  }
}

</mosaic_0001>

<bundles_post_ra>
// kernel: _device_forward.1
= control target key start
LH: loop header
LB: loop body
LE: loop exit
PB: predicated region body
PF: predicated region fallthrough
CT: control target
= control target key end

     0   :  { %11 = vsyncpa [#allocation4], 0  ;;  %s2680_s15 = smov [#allocation3]   ;;  %s3972_s0 = inlined_call_operand.hbm [shape: f32[2,16,32], index: 0, kind: input, shape index: {}]   ;;  %s3973_s1 = inlined_call_operand.vmem [shape: f32[2,32], index: 1, kind: input, shape index: {}]   ;;  %s3974_s2 = inlined_call_operand.<no memory space> [shape: f32[1,1], index: 2, kind: input, shape index: {}]   ;;  %s3975_s3 = inlined_call_operand.vmem [shape: s32[2,16,4], index: 3, kind: output, shape index: {0}]   ;;  %s3976_s4 = inlined_call_operand.vmem [shape: f32[2,16,4], index: 4, kind: output, shape index: {1}]  }
   0x1   :  { %s17_s16 = sshll.u32 %s2680_s15, 4  ;;  %s2656_s19 = scalar_lea.hbm %s3972_s0, 512  ;;  %s18_s16 = int_to_ptr.vmem [resolvable:$true] %s17_s16 }
   0x2   :  { %p2657_p0 = scmp.ne.s32.totalorder %s3972_s0, %s2656_s19  ;;  %p2660_p1 = scmp.lt.u32.totalorder %s2656_s19, %s3972_s0 }
   0x4   :  { %p2662_p2 = pnand %p2660_p1, %p2657_p0 }
   0x6   :  { %2665 = shalt.err (!%p2662_p2)
}
   0x7   :  { %s2666_s24 = scalar_lea.vmem %s18_s16, 512  ;;  %p2671_p4 = scmp.lt.s32.totalorder %s18_s16, %s18_s16 }
   0x8   :  { %p2667_p3 = scmp.ne.s32.totalorder %s18_s16, %s2666_s24  ;;  %p2672_p5 = scmp.lt.s32.totalorder %s2666_s24, %s2666_s24 }
   0xa   :  { %p2673_p6 = por %p2672_p5, %p2671_p4 }
   0xc   :  { %p2674_p7 = pnand %p2673_p6, %p2667_p3 }
   0xe   :  { %2677 = shalt.err (!%p2674_p7)
}
   0xf   :  { %s2681_s25 = smov 128   ;;  %s2682_s26 = smov 8  }
  0x10   :  { %23 = dma.hbm_to_vmem [thread:$0]  %s3972_s0, 512, %s18_s16, [#allocation4], %s2681_s25, %s2681_s25, %s2682_s26  }
  0x11   :  { %2678 = dma.done.wait [#allocation4], 512  }
  0x12   :  { %2679 = vsyncadd [#allocation4], 4294966784  ;;  %v2683_v0 = vmov 0.0   ;;  %vm2684_vm0 = vmmov 0   ;;  %v32_v1 = vld [vmem:[#allocation3] sm:$0xff]  ;;  %v33_v2 = vld [vmem:[#allocation3 + $0x8] sm:$0xff]  ;;  %v151_v17 = vlaneseq }
  0x13   :  { %2616 = vmatprep.subr.bf16.mxu0 %v2683_v0  ;;  %2622 = vmatprep.subr.bf16.mxu1 %v2683_v0  ;;  %vm38_vm1 = vcmask 261120   ;;  %v34_v3 = vld [vmem:[#allocation3 + $0x10] sm:$0xff]  ;;  %v36_v4 = vpack.c.bf16 %v33_v2, %v32_v1  ;;  %v35_v5 = vld [vmem:[#allocation3 + $0x18] sm:$0xff]  ;;  %v127_v7 = vmul.f32 %v32_v1, %v32_v1  ;;  %v128_v10 = vmul.f32 %v33_v2, %v33_v2 }
  0x14   :  { %2618 = vmatprep.mubr.msk.bf16.mxu0 %vm2684_vm0, %v2683_v0  ;;  %2624 = vmatprep.mubr.msk.bf16.mxu1 %vm2684_vm0, %v2683_v0  ;;  %v129_v6 = vmul.f32 %v34_v3, %v34_v3  ;;  %v37_v8 = vpack.c.bf16 %v35_v5, %v34_v3  ;;  %v130_v9 = vmul.f32 %v35_v5, %v35_v5  ;;  %v2731_v18 = vand.u32 127, %v151_v17 }
  0x15   :  { %v40_v11 = vsel %vm38_vm1, %v36_v4, 0  ;;  %v131_v13 = vsel %vm38_vm1, %v127_v7, 0.0  ;;  %v134_v16 = vsel %vm38_vm1, %v128_v10, 0.0  ;;  %v2735_v19 = vshrl.u32 %v151_v17, 7 }
  0x16   :  { %v137_v12 = vsel %vm38_vm1, %v129_v6, 0.0  ;;  %2617 = vmatpush3.bf16.xpose.msra.mxu0 %v40_v11  ;;  %v84_v14 = vsel %vm38_vm1, %v37_v8, 0  ;;  %132 = vadd.xlane.f32.xlu0 %v131_v13  ;;  %v140_v15 = vsel %vm38_vm1, %v130_v9, 0.0  ;;  %4037 = vst [vmem:[#allocation6_spill] sm:$0xff] %v2731_v18  ;;  %v2685_v25 = vmov 0  }
  0x17   :  { %138 = vadd.xlane.f32.xlu1 %v137_v12  ;;  %2623 = vmatpush3.bf16.xpose.msra.mxu1 %v84_v14  ;;  %v2738_v20 = vsub.s32 0, %v2735_v19  ;;  %v2742_v31 = vsub.s32 1, %v2735_v19  ;;  %v2748_v37 = vsub.s32 2, %v2735_v19  ;;  %v2753_v40 = vsub.s32 3, %v2735_v19 }
  0x18   :  { %2634 = vset.pattern.permute.xlu0 %v2685_v25  ;;  %2635 = vset.pattern.permute.xlu1 %v2685_v25  ;;  %v2758_v43 = vsub.s32 4, %v2735_v19  ;;  %v2763_v46 = vsub.s32 5, %v2735_v19  ;;  %v2768_v49 = vsub.s32 6, %v2735_v19  ;;  %v2773_v52 = vsub.s32 7, %v2735_v19 }
  0x19   :  { %vm940_vm2 = vcmask 130112   ;;  %vm1221_vm3 = vcmask 1041409   ;;  %vm1223_vm4 = vcmask 1042434   ;;  %vm1225_vm5 = vcmask 1043459  }
  0x1a   :  { %135 = vadd.xlane.f32.xlu0 %v134_v16  ;;  %4038 = vst [vmem:[#allocation7_spill] sm:$0xff] %v2763_v46  ;;  %4039 = vst [vmem:[#allocation8_spill] sm:$0xff] %v2768_v49  ;;  %vm1227_vm6 = vcmask 1044484   ;;  %vm1229_vm7 = vcmask 1045509   ;;  %vm1231_vm8 = vcmask 1046534   ;;  %vm1233_vm9 = vcmask 1047559  }
  0x1b   :  { %141 = vadd.xlane.f32.xlu1 %v140_v15  ;;  %4040 = vst [vmem:[#allocation9_spill] sm:$0xff] %v2773_v52  ;;  %vm1260_vm10 = vcmask 130048  }
  0x1d   :  { %2619 = vmatmul.mubr.msk.bf16.vlgmr.msra.gmra.mrb[0].mxu0 %vm38_vm1, %v36_v4 }
  0x1e   :  { %2625 = vmatmul.mubr.msk.bf16.vlgmr.msra.gmra.mrb[0].mxu1 %vm38_vm1, %v37_v8 }
  0x2c   :  { %1502 = vbcast.lane.b32.xlu1 %v2731_v18, 256 }
  0x30   :  { %1506 = vbcast.lane.b32.xlu0 %v2731_v18, 264 }
  0xa3   :  { %v2789_v4 = vpop.xlane.xlu0 %132 }
  0xa4   :  { %v2787_v3 = vpop.xlane.xlu1 %138 }
  0xa7   :  { %v2795_v8 = vpop.xlane.xlu0 %135 }
  0xa8   :  { %v2793_v7 = vpop.xlane.xlu1 %141 }
  0xab   :  { %v2800_v11 = vpop.permute.xlu0 %1506 }
  0xac   :  { %v2798_v10 = vpop.permute.xlu1 %1502 }
  0xf0   :  { %v76_v21 = vpop.f32.mrb[0].mxu0 }
  0xf1   :  { %v143_v22 = vmul.f32 2.0, %v76_v21  ;;  %v2620_v23 = vpop.f32.mrb[1].mxu0  ;;  %v120_v24 = vpop.f32.mrb[0].mxu1 }
  0xf2   :  { %v79_v26 = vpop.f32.mrb[2].mxu0  ;;  %v145_v27 = vmul.f32 2.0, %v120_v24  ;;  %v2626_v28 = vpop.f32.mrb[1].mxu1 }
  0xf3   :  { %v2621_v29 = vpop.f32.mrb[3].mxu0  ;;  %v154_v30 = vrot.slane %v143_v22, %v2738_v20  ;;  %v123_v32 = vpop.f32.mrb[2].mxu1  ;;  %v165_v35 = vrot.slane %v143_v22, %v2742_v31  ;;  %v176_v38 = vrot.slane %v143_v22, %v2748_v37  ;;  %v187_v41 = vrot.slane %v143_v22, %v2753_v40 }
  0xf4   :  { %v2627_v33 = vpop.f32.mrb[3].mxu1  ;;  %v330_v34 = vrot.slane %v145_v27, %v2738_v20  ;;  %v341_v36 = vrot.slane %v145_v27, %v2742_v31  ;;  %v352_v39 = vrot.slane %v145_v27, %v2748_v37  ;;  %v363_v42 = vrot.slane %v145_v27, %v2753_v40 }
  0xf5   :  { %160 = vbcast.lane.b32.xlu1 %v154_v30, 264  ;;  %156 = vbcast.lane.b32.xlu0 %v154_v30, 256  ;;  %v198_v44 = vrot.slane %v143_v22, %v2758_v43  ;;  %v374_v45 = vrot.slane %v145_v27, %v2758_v43  ;;  %v209_v47 = vrot.slane %v143_v22, %v2763_v46  ;;  %v144_v54 = vmul.f32 2.0, %v79_v26 }
  0xf6   :  { %v385_v48 = vrot.slane %v145_v27, %v2763_v46  ;;  %v220_v50 = vrot.slane %v143_v22, %v2768_v49  ;;  %v396_v51 = vrot.slane %v145_v27, %v2768_v49  ;;  %v231_v53 = vrot.slane %v143_v22, %v2773_v52 }
  0xf7   :  { %v407_v55 = vrot.slane %v145_v27, %v2773_v52  ;;  %v242_v56 = vrot.slane %v144_v54, %v2738_v20  ;;  %v146_v57 = vmul.f32 2.0, %v123_v32  ;;  %v253_v58 = vrot.slane %v144_v54, %v2742_v31 }
  0xf8   :  { %v264_v61 = vrot.slane %v144_v54, %v2748_v37  ;;  %v275_v63 = vrot.slane %v144_v54, %v2753_v40  ;;  %v286_v1 = vrot.slane %v144_v54, %v2758_v43  ;;  %v297_v5 = vrot.slane %v144_v54, %v2763_v46 }
  0xf9   :  { %167 = vbcast.lane.b32.xlu1 %v165_v35, 256  ;;  %332 = vbcast.lane.b32.xlu0 %v330_v34, 256  ;;  %v418_v59 = vrot.slane %v146_v57, %v2738_v20  ;;  %v429_v60 = vrot.slane %v146_v57, %v2742_v31  ;;  %v440_v62 = vrot.slane %v146_v57, %v2748_v37 }
  0xfa   :  { %v451_v0 = vrot.slane %v146_v57, %v2753_v40  ;;  %v462_v2 = vrot.slane %v146_v57, %v2758_v43  ;;  %v473_v6 = vrot.slane %v146_v57, %v2763_v46  ;;  %v308_v9 = vrot.slane %v144_v54, %v2768_v49 }
  0xfb   :  { %v484_v12 = vrot.slane %v146_v57, %v2768_v49  ;;  %v319_v15 = vrot.slane %v144_v54, %v2773_v52  ;;  %v495_v21 = vrot.slane %v146_v57, %v2773_v52 }
  0xfd   :  { %171 = vbcast.lane.b32.xlu1 %v165_v35, 264  ;;  %343 = vbcast.lane.b32.xlu0 %v341_v36, 256 }
 0x101   :  { %336 = vbcast.lane.b32.xlu1 %v330_v34, 264  ;;  %178 = vbcast.lane.b32.xlu0 %v176_v38, 256 }
 0x105   :  { %347 = vbcast.lane.b32.xlu1 %v341_v36, 264  ;;  %354 = vbcast.lane.b32.xlu0 %v352_v39, 256 }
 0x109   :  { %182 = vbcast.lane.b32.xlu1 %v176_v38, 264  ;;  %189 = vbcast.lane.b32.xlu0 %v187_v41, 256 }
 0x10d   :  { %358 = vbcast.lane.b32.xlu1 %v352_v39, 264  ;;  %365 = vbcast.lane.b32.xlu0 %v363_v42, 256 }
 0x111   :  { %193 = vbcast.lane.b32.xlu1 %v187_v41, 264  ;;  %200 = vbcast.lane.b32.xlu0 %v198_v44, 256 }
 0x115   :  { %369 = vbcast.lane.b32.xlu1 %v363_v42, 264  ;;  %376 = vbcast.lane.b32.xlu0 %v374_v45, 256 }
 0x119   :  { %204 = vbcast.lane.b32.xlu1 %v198_v44, 264  ;;  %211 = vbcast.lane.b32.xlu0 %v209_v47, 256 }
 0x11d   :  { %380 = vbcast.lane.b32.xlu1 %v374_v45, 264  ;;  %387 = vbcast.lane.b32.xlu0 %v385_v48, 256 }
 0x121   :  { %215 = vbcast.lane.b32.xlu1 %v209_v47, 264  ;;  %222 = vbcast.lane.b32.xlu0 %v220_v50, 256 }
 0x125   :  { %391 = vbcast.lane.b32.xlu1 %v385_v48, 264  ;;  %398 = vbcast.lane.b32.xlu0 %v396_v51, 256 }
 0x129   :  { %226 = vbcast.lane.b32.xlu1 %v220_v50, 264  ;;  %233 = vbcast.lane.b32.xlu0 %v231_v53, 256 }
 0x12d   :  { %402 = vbcast.lane.b32.xlu1 %v396_v51, 264  ;;  %409 = vbcast.lane.b32.xlu0 %v407_v55, 256 }
 0x131   :  { %237 = vbcast.lane.b32.xlu1 %v231_v53, 264  ;;  %244 = vbcast.lane.b32.xlu0 %v242_v56, 256 }
 0x135   :  { %413 = vbcast.lane.b32.xlu1 %v407_v55, 264  ;;  %255 = vbcast.lane.b32.xlu0 %v253_v58, 256 }
 0x139   :  { %248 = vbcast.lane.b32.xlu1 %v242_v56, 264  ;;  %420 = vbcast.lane.b32.xlu0 %v418_v59, 256 }
 0x13d   :  { %259 = vbcast.lane.b32.xlu1 %v253_v58, 264  ;;  %431 = vbcast.lane.b32.xlu0 %v429_v60, 256 }
 0x141   :  { %424 = vbcast.lane.b32.xlu1 %v418_v59, 264  ;;  %266 = vbcast.lane.b32.xlu0 %v264_v61, 256 }
 0x145   :  { %435 = vbcast.lane.b32.xlu1 %v429_v60, 264  ;;  %442 = vbcast.lane.b32.xlu0 %v440_v62, 256 }
 0x149   :  { %270 = vbcast.lane.b32.xlu1 %v264_v61, 264  ;;  %277 = vbcast.lane.b32.xlu0 %v275_v63, 256 }
 0x14d   :  { %446 = vbcast.lane.b32.xlu1 %v440_v62, 264  ;;  %453 = vbcast.lane.b32.xlu0 %v451_v0, 256 }
 0x151   :  { %281 = vbcast.lane.b32.xlu1 %v275_v63, 264  ;;  %288 = vbcast.lane.b32.xlu0 %v286_v1, 256 }
 0x155   :  { %457 = vbcast.lane.b32.xlu1 %v451_v0, 264  ;;  %464 = vbcast.lane.b32.xlu0 %v462_v2, 256 }
 0x159   :  { %292 = vbcast.lane.b32.xlu1 %v286_v1, 264  ;;  %299 = vbcast.lane.b32.xlu0 %v297_v5, 256 }
 0x15d   :  { %468 = vbcast.lane.b32.xlu1 %v462_v2, 264  ;;  %475 = vbcast.lane.b32.xlu0 %v473_v6, 256 }
 0x161   :  { %303 = vbcast.lane.b32.xlu1 %v297_v5, 264  ;;  %310 = vbcast.lane.b32.xlu0 %v308_v9, 256 }
 0x165   :  { %479 = vbcast.lane.b32.xlu1 %v473_v6, 264  ;;  %486 = vbcast.lane.b32.xlu0 %v484_v12, 256 }
 0x167   :  { %v161_v13 = vpop.permute.xlu1 %160  ;;  %v157_v14 = vpop.permute.xlu0 %156 }
 0x168   :  { %v2806_v22 = vsub.f32 %v2789_v4, %v157_v14  ;;  %v2814_v28 = vsub.f32 %v2795_v8, %v161_v13 }
 0x169   :  { %314 = vbcast.lane.b32.xlu1 %v308_v9, 264  ;;  %321 = vbcast.lane.b32.xlu0 %v319_v15, 256 }
 0x16b   :  { %v168_v16 = vpop.permute.xlu1 %167  ;;  %v333_v17 = vpop.permute.xlu0 %332 }
 0x16c   :  { %v2822_v33 = vsub.f32 %v2789_v4, %v168_v16  ;;  %v2830_v38 = vsub.f32 %v2787_v3, %v333_v17 }
 0x16d   :  { %490 = vbcast.lane.b32.xlu1 %v484_v12, 264  ;;  %497 = vbcast.lane.b32.xlu0 %v495_v21, 256 }
 0x16f   :  { %v172_v23 = vpop.permute.xlu1 %171  ;;  %v344_v24 = vpop.permute.xlu0 %343 }
 0x170   :  { %v2810_v25 = vsub.f32 %v2795_v8, %v172_v23  ;;  %v2838_v44 = vsub.f32 %v2787_v3, %v344_v24 }
 0x171   :  { %325 = vbcast.lane.b32.xlu1 %v319_v15, 264  ;;  %740 = vperm.xlu0 %2634, %v2806_v22  }
 0x173   :  { %v337_v26 = vpop.permute.xlu1 %336  ;;  %v179_v27 = vpop.permute.xlu0 %178 }
 0x174   :  { %v2817_v29 = vsub.f32 %v2793_v7, %v337_v26  ;;  %v2846_v50 = vsub.f32 %v2789_v4, %v179_v27 }
 0x175   :  { %501 = vbcast.lane.b32.xlu1 %v495_v21, 264  ;;  %749 = vperm.xlu0 %2634, %v2810_v25  }
 0x177   :  { %v348_v30 = vpop.permute.xlu1 %347  ;;  %v355_v32 = vpop.permute.xlu0 %354 }
 0x178   :  { %v2825_v34 = vsub.f32 %v2793_v7, %v348_v30  ;;  %v2854_v55 = vsub.f32 %v2787_v3, %v355_v32 }
 0x179   :  { %743 = vperm.xlu1 %2635, %v2814_v28   ;;  %839 = vperm.xlu0 %2634, %v2817_v29  }
 0x17b   :  { %v183_v35 = vpop.permute.xlu1 %182  ;;  %v190_v36 = vpop.permute.xlu0 %189 }
 0x17c   :  { %v2833_v39 = vsub.f32 %v2795_v8, %v183_v35  ;;  %v2862_v59 = vsub.f32 %v2789_v4, %v190_v36 }
 0x17d   :  { %746 = vperm.xlu1 %2635, %v2822_v33   ;;  %845 = vperm.xlu0 %2634, %v2825_v34  }
 0x17f   :  { %v359_v41 = vpop.permute.xlu1 %358  ;;  %v366_v42 = vpop.permute.xlu0 %365 }
 0x180   :  { %v2841_v45 = vsub.f32 %v2793_v7, %v359_v41  ;;  %v2870_v63 = vsub.f32 %v2787_v3, %v366_v42 }
 0x181   :  { %836 = vperm.xlu1 %2635, %v2830_v38   ;;  %755 = vperm.xlu0 %2634, %v2833_v39  }
 0x183   :  { %v194_v47 = vpop.permute.xlu1 %193  ;;  %v201_v48 = vpop.permute.xlu0 %200 }
 0x184   :  { %v2849_v51 = vsub.f32 %v2795_v8, %v194_v47  ;;  %v2878_v5 = vsub.f32 %v2789_v4, %v201_v48 }
 0x185   :  { %842 = vperm.xlu1 %2635, %v2838_v44   ;;  %851 = vperm.xlu0 %2634, %v2841_v45  }
 0x186   :  { %4041 = vst [vmem:[#allocation10_spill] sm:$0xff] %v2878_v5 }
 0x187   :  { %v370_v53 = vpop.permute.xlu1 %369  ;;  %v377_v54 = vpop.permute.xlu0 %376 }
 0x188   :  { %v2857_v56 = vsub.f32 %v2793_v7, %v370_v53  ;;  %v2886_v13 = vsub.f32 %v2787_v3, %v377_v54 }
 0x189   :  { %752 = vperm.xlu1 %2635, %v2846_v50   ;;  %761 = vperm.xlu0 %2634, %v2849_v51  }
 0x18a   :  { %4043 = vst [vmem:[#allocation12_spill] sm:$0xff] %v2886_v13 }
 0x18b   :  { %v205_v57 = vpop.permute.xlu1 %204  ;;  %v212_v58 = vpop.permute.xlu0 %211 }
 0x18c   :  { %v2865_v60 = vsub.f32 %v2795_v8, %v205_v57  ;;  %v2894_v17 = vsub.f32 %v2789_v4, %v212_v58 }
 0x18d   :  { %848 = vperm.xlu1 %2635, %v2854_v55   ;;  %857 = vperm.xlu0 %2634, %v2857_v56  }
 0x18e   :  { %4045 = vst [vmem:[#allocation14_spill] sm:$0xff] %v2894_v17 }
 0x18f   :  { %v381_v61 = vpop.permute.xlu1 %380  ;;  %v388_v62 = vpop.permute.xlu0 %387 }
 0x190   :  { %v2873_v0 = vsub.f32 %v2793_v7, %v381_v61  ;;  %v2902_v26 = vsub.f32 %v2787_v3, %v388_v62 }
 0x191   :  { %758 = vperm.xlu1 %2635, %v2862_v59   ;;  %767 = vperm.xlu0 %2634, %v2865_v60  }
 0x192   :  { %4047 = vst [vmem:[#allocation16_spill] sm:$0xff] %v2902_v26 }
 0x193   :  { %v216_v1 = vpop.permute.xlu1 %215  ;;  %v223_v2 = vpop.permute.xlu0 %222 }
 0x194   :  { %v2881_v6 = vsub.f32 %v2795_v8, %v216_v1  ;;  %v2910_v35 = vsub.f32 %v2789_v4, %v223_v2 }
 0x195   :  { %854 = vperm.xlu1 %2635, %v2870_v63   ;;  %863 = vperm.xlu0 %2634, %v2873_v0  }
 0x196   :  { %4042 = vst [vmem:[#allocation11_spill] sm:$0xff] %v2881_v6  ;;  %4049 = vst [vmem:[#allocation18_spill] sm:$0xff] %v2910_v35 }
 0x197   :  { %v392_v9 = vpop.permute.xlu1 %391  ;;  %v399_v12 = vpop.permute.xlu0 %398 }
 0x198   :  { %v2889_v14 = vsub.f32 %v2793_v7, %v392_v9  ;;  %v2918_v47 = vsub.f32 %v2787_v3, %v399_v12 }
 0x199   :  { %764 = vperm.xlu1 %2635, %v2878_v5   ;;  %773 = vperm.xlu0 %2634, %v2881_v6  }
 0x19a   :  { %4044 = vst [vmem:[#allocation13_spill] sm:$0xff] %v2889_v14  ;;  %4051 = vst [vmem:[#allocation20_spill] sm:$0xff] %v2918_v47 }
 0x19b   :  { %v227_v15 = vpop.permute.xlu1 %226  ;;  %v234_v16 = vpop.permute.xlu0 %233 }
 0x19c   :  { %v2897_v21 = vsub.f32 %v2795_v8, %v227_v15  ;;  %v2926_v57 = vsub.f32 %v2789_v4, %v234_v16 }
 0x19d   :  { %860 = vperm.xlu1 %2635, %v2886_v13   ;;  %869 = vperm.xlu0 %2634, %v2889_v14  }
 0x19e   :  { %4046 = vst [vmem:[#allocation15_spill] sm:$0xff] %v2897_v21  ;;  %4053 = vst [vmem:[#allocation22_spill] sm:$0xff] %v2926_v57 }
 0x19f   :  { %v403_v23 = vpop.permute.xlu1 %402  ;;  %v410_v24 = vpop.permute.xlu0 %409 }
 0x1a0   :  { %v2905_v27 = vsub.f32 %v2793_v7, %v403_v23  ;;  %v2934_v1 = vsub.f32 %v2787_v3, %v410_v24 }
 0x1a1   :  { %770 = vperm.xlu1 %2635, %v2894_v17   ;;  %779 = vperm.xlu0 %2634, %v2897_v21  }
 0x1a2   :  { %4048 = vst [vmem:[#allocation17_spill] sm:$0xff] %v2905_v27  ;;  %4055 = vst [vmem:[#allocation24_spill] sm:$0xff] %v2934_v1 }
 0x1a3   :  { %v238_v30 = vpop.permute.xlu1 %237  ;;  %v245_v32 = vpop.permute.xlu0 %244 }
 0x1a4   :  { %v2913_v36 = vsub.f32 %v2795_v8, %v238_v30  ;;  %v2942_v15 = vsub.f32 %v2789_v4, %v245_v32 }
 0x1a5   :  { %866 = vperm.xlu1 %2635, %v2902_v26   ;;  %875 = vperm.xlu0 %2634, %v2905_v27  }
 0x1a6   :  { %4050 = vst [vmem:[#allocation19_spill] sm:$0xff] %v2913_v36  ;;  %4057 = vst [vmem:[#allocation26_spill] sm:$0xff] %v2942_v15 }
 0x1a7   :  { %v414_v41 = vpop.permute.xlu1 %413  ;;  %v256_v42 = vpop.permute.xlu0 %255 }
 0x1a8   :  { %v2921_v48 = vsub.f32 %v2793_v7, %v414_v41  ;;  %v2950_v24 = vsub.f32 %v2789_v4, %v256_v42 }
 0x1a9   :  { %776 = vperm.xlu1 %2635, %v2910_v35   ;;  %785 = vperm.xlu0 %2634, %v2913_v36   ;;  %v3080_v36 = vsub.s32 %v2731_v18, %v2735_v19 }
 0x1aa   :  { %4052 = vst [vmem:[#allocation21_spill] sm:$0xff] %v2921_v48  ;;  %4059 = vst [vmem:[#allocation28_spill] sm:$0xff] %v2950_v24 }
 0x1ab   :  { %v249_v53 = vpop.permute.xlu1 %248  ;;  %v421_v54 = vpop.permute.xlu0 %420 }
 0x1ac   :  { %v2929_v58 = vsub.f32 %v2795_v8, %v249_v53  ;;  %v2958_v32 = vsub.f32 %v2787_v3, %v421_v54 }
 0x1ad   :  { %872 = vperm.xlu1 %2635, %v2918_v47   ;;  %881 = vperm.xlu0 %2634, %v2921_v48   ;;  %v935_v47 = vadd.s32 4294967288, %v2731_v18 }
 0x1ae   :  { %4054 = vst [vmem:[#allocation23_spill] sm:$0xff] %v2929_v58  ;;  %4061 = vst [vmem:[#allocation30_spill] sm:$0xff] %v2958_v32 }
 0x1af   :  { %v260_v61 = vpop.permute.xlu1 %259  ;;  %v432_v62 = vpop.permute.xlu0 %431  ;;  %v3083_v52 = vsub.s32 %v935_v47, %v2735_v19 }
 0x1b0   :  { %v2937_v2 = vsub.f32 %v2795_v8, %v260_v61  ;;  %v2966_v42 = vsub.f32 %v2787_v3, %v432_v62 }
 0x1b1   :  { %782 = vperm.xlu1 %2635, %v2926_v57   ;;  %791 = vperm.xlu0 %2634, %v2929_v58  }
 0x1b2   :  { %4056 = vst [vmem:[#allocation25_spill] sm:$0xff] %v2937_v2  ;;  %4063 = vst [vmem:[#allocation32_spill] sm:$0xff] %v2966_v42 }
 0x1b3   :  { %v425_v9 = vpop.permute.xlu1 %424  ;;  %v267_v12 = vpop.permute.xlu0 %266 }
 0x1b4   :  { %v2945_v16 = vsub.f32 %v2793_v7, %v425_v9  ;;  %v2974_v54 = vsub.f32 %v2789_v4, %v267_v12 }
 0x1b5   :  { %878 = vperm.xlu1 %2635, %v2934_v1   ;;  %797 = vperm.xlu0 %2634, %v2937_v2  }
 0x1b6   :  { %4058 = vst [vmem:[#allocation27_spill] sm:$0xff] %v2945_v16  ;;  %4065 = vst [vmem:[#allocation34_spill] sm:$0xff] %v2974_v54 }
 0x1b7   :  { %v436_v23 = vpop.permute.xlu1 %435  ;;  %v443_v30 = vpop.permute.xlu0 %442 }
 0x1b8   :  { %v2953_v41 = vsub.f32 %v2793_v7, %v436_v23  ;;  %v2982_v62 = vsub.f32 %v2787_v3, %v443_v30 }
 0x1b9   :  { %887 = vperm.xlu0 %2634, %v2945_v16   ;;  %788 = vperm.xlu1 %2635, %v2942_v15  }
 0x1ba   :  { %4060 = vst [vmem:[#allocation29_spill] sm:$0xff] %v2953_v41  ;;  %4067 = vst [vmem:[#allocation36_spill] sm:$0xff] %v2982_v62 }
 0x1bb   :  { %v271_v53 = vpop.permute.xlu1 %270  ;;  %v278_v61 = vpop.permute.xlu0 %277 }
 0x1bc   :  { %v2961_v9 = vsub.f32 %v2795_v8, %v271_v53 }
 0x1bd   :  { %893 = vperm.xlu0 %2634, %v2953_v41   ;;  %794 = vperm.xlu1 %2635, %v2950_v24  }
 0x1be   :  { %4062 = vst [vmem:[#allocation31_spill] sm:$0xff] %v2961_v9 }
 0x1bf   :  { %v447_v16 = vpop.permute.xlu1 %446  ;;  %v454_v15 = vpop.permute.xlu0 %453 }
 0x1c0   :  { %v2969_v23 = vsub.f32 %v2793_v7, %v447_v16  ;;  %v2998_v30 = vsub.f32 %v2787_v3, %v454_v15 }
 0x1c1   :  { %803 = vperm.xlu0 %2634, %v2961_v9   ;;  %884 = vperm.xlu1 %2635, %v2958_v32  }
 0x1c2   :  { %4064 = vst [vmem:[#allocation33_spill] sm:$0xff] %v2969_v23  ;;  %4071 = vst [vmem:[#allocation40_spill] sm:$0xff] %v2998_v30 }
 0x1c3   :  { %v282_v41 = vpop.permute.xlu1 %281  ;;  %v289_v24 = vpop.permute.xlu0 %288 }
 0x1c4   :  { %v2977_v53 = vsub.f32 %v2795_v8, %v282_v41  ;;  %v2990_v41 = vsub.f32 %v2789_v4, %v278_v61  ;;  %v3006_v61 = vsub.f32 %v2789_v4, %v289_v24 }
 0x1c5   :  { %899 = vperm.xlu0 %2634, %v2969_v23   ;;  %890 = vperm.xlu1 %2635, %v2966_v42  }
 0x1c6   :  { %4066 = vst [vmem:[#allocation35_spill] sm:$0xff] %v2977_v53  ;;  %4069 = vst [vmem:[#allocation38_spill] sm:$0xff] %v2990_v41 }
 0x1c7   :  { %v458_v9 = vpop.permute.xlu1 %457  ;;  %v465_v32 = vpop.permute.xlu0 %464  ;;  %4073 = vst [vmem:[#allocation42_spill] sm:$0xff] %v3006_v61 }
 0x1c8   :  { %v2985_v16 = vsub.f32 %v2793_v7, %v458_v9 }
 0x1c9   :  { %809 = vperm.xlu0 %2634, %v2977_v53   ;;  %800 = vperm.xlu1 %2635, %v2974_v54  }
 0x1ca   :  { %4068 = vst [vmem:[#allocation37_spill] sm:$0xff] %v2985_v16 }
 0x1cb   :  { %v293_v23 = vpop.permute.xlu1 %292  ;;  %v300_v12 = vpop.permute.xlu0 %299 }
 0x1cc   :  { %v2993_v42 = vsub.f32 %v2795_v8, %v293_v23  ;;  %v3022_v24 = vsub.f32 %v2789_v4, %v300_v12 }
 0x1cd   :  { %905 = vperm.xlu0 %2634, %v2985_v16   ;;  %896 = vperm.xlu1 %2635, %v2982_v62  }
 0x1ce   :  { %4070 = vst [vmem:[#allocation39_spill] sm:$0xff] %v2993_v42  ;;  %4077 = vst [vmem:[#allocation46_spill] sm:$0xff] %v3022_v24 }
 0x1cf   :  { %v469_v53 = vpop.permute.xlu1 %468  ;;  %v476_v62 = vpop.permute.xlu0 %475 }
 0x1d0   :  { %v3001_v9 = vsub.f32 %v2793_v7, %v469_v53  ;;  %v3014_v53 = vsub.f32 %v2787_v3, %v465_v32  ;;  %v3030_v32 = vsub.f32 %v2787_v3, %v476_v62 }
 0x1d1   :  { %815 = vperm.xlu0 %2634, %v2993_v42   ;;  %806 = vperm.xlu1 %2635, %v2990_v41  }
 0x1d2   :  { %4072 = vst [vmem:[#allocation41_spill] sm:$0xff] %v3001_v9  ;;  %4075 = vst [vmem:[#allocation44_spill] sm:$0xff] %v3014_v53 }
 0x1d3   :  { %v304_v16 = vpop.permute.xlu1 %303  ;;  %v311_v15 = vpop.permute.xlu0 %310  ;;  %4079 = vst [vmem:[#allocation48_spill] sm:$0xff] %v3030_v32 }
 0x1d4   :  { %v3009_v23 = vsub.f32 %v2795_v8, %v304_v16 }
 0x1d5   :  { %911 = vperm.xlu0 %2634, %v3001_v9   ;;  %902 = vperm.xlu1 %2635, %v2998_v30  }
 0x1d6   :  { %4074 = vst [vmem:[#allocation43_spill] sm:$0xff] %v3009_v23 }
 0x1d7   :  { %v480_v42 = vpop.permute.xlu1 %479 }
 0x1d8   :  { %v3017_v41 = vsub.f32 %v2793_v7, %v480_v42 }
 0x1d9   :  { %821 = vperm.xlu0 %2634, %v3009_v23   ;;  %812 = vperm.xlu1 %2635, %v3006_v61   ;;  %v487_v61 = vpop.permute.xlu0 %486 }
 0x1da   :  { %4076 = vst [vmem:[#allocation45_spill] sm:$0xff] %v3017_v41  ;;  %v3046_v62 = vsub.f32 %v2787_v3, %v487_v61 }
 0x1db   :  { %v315_v9 = vpop.permute.xlu1 %314 }
 0x1dc   :  { %v3025_v16 = vsub.f32 %v2795_v8, %v315_v9  ;;  %v3038_v9 = vsub.f32 %v2789_v4, %v311_v15  ;;  %4083 = vst [vmem:[#allocation52_spill] sm:$0xff] %v3046_v62 }
 0x1dd   :  { %917 = vperm.xlu0 %2634, %v3017_v41   ;;  %908 = vperm.xlu1 %2635, %v3014_v53   ;;  %v322_v12 = vpop.permute.xlu0 %321 }
 0x1de   :  { %4078 = vst [vmem:[#allocation47_spill] sm:$0xff] %v3025_v16  ;;  %4081 = vst [vmem:[#allocation50_spill] sm:$0xff] %v3038_v9  ;;  %v3054_v15 = vsub.f32 %v2789_v4, %v322_v12 }
 0x1df   :  { %v491_v23 = vpop.permute.xlu1 %490 }
 0x1e0   :  { %v3033_v42 = vsub.f32 %v2793_v7, %v491_v23  ;;  %4085 = vst [vmem:[#allocation54_spill] sm:$0xff] %v3054_v15 }
 0x1e1   :  { %827 = vperm.xlu0 %2634, %v3025_v16   ;;  %818 = vperm.xlu1 %2635, %v3022_v24  }
 0x1e2   :  { %4080 = vst [vmem:[#allocation49_spill] sm:$0xff] %v3033_v42 }
 0x1e3   :  { %v326_v41 = vpop.permute.xlu1 %325 }
 0x1e4   :  { %v3041_v53 = vsub.f32 %v2795_v8, %v326_v41 }
 0x1e5   :  { %923 = vperm.xlu0 %2634, %v3033_v42   ;;  %914 = vperm.xlu1 %2635, %v3030_v32   ;;  %v498_v42 = vpop.permute.xlu0 %497 }
 0x1e6   :  { %4082 = vst [vmem:[#allocation51_spill] sm:$0xff] %v3041_v53  ;;  %v3058_v41 = vsub.f32 %v2787_v3, %v498_v42 }
 0x1e7   :  { %v502_v16 = vpop.permute.xlu1 %501 }
 0x1e8   :  { %v3049_v23 = vsub.f32 %v2793_v7, %v502_v16  ;;  %4086 = vst [vmem:[#allocation55_spill] sm:$0xff] %v3058_v41 }
 0x1e9   :  { %833 = vperm.xlu0 %2634, %v3041_v53   ;;  %824 = vperm.xlu1 %2635, %v3038_v9  }
 0x1ea   :  { %4084 = vst [vmem:[#allocation53_spill] sm:$0xff] %v3049_v23 }
 0x1ed   :  { %929 = vperm.xlu0 %2634, %v3049_v23   ;;  %920 = vperm.xlu1 %2635, %v3046_v62  }
 0x1f0   :  { %v741_v8 = vpop.permute.xlu0 %740 }
 0x1f1   :  { %830 = vperm.xlu1 %2635, %v3054_v15   ;;  %v934_v18 = vrot.slane %v741_v8, %v3080_v36 }
 0x1f4   :  { %v750_v53 = vpop.permute.xlu0 %749 }
 0x1f5   :  { %926 = vperm.xlu1 %2635, %v3058_v41   ;;  %v949_v49 = vrot.slane %v750_v53, %v3083_v52 }
 0x1f8   :  { %v744_v61 = vpop.permute.xlu1 %743  ;;  %v840_v7 = vpop.permute.xlu0 %839 }
 0x1f9   :  { %v939_v21 = vrot.slane %v744_v61, %v3083_v52 }
 0x1fb   :  { %v941_v53 = vsel %vm940_vm2, %v939_v21, %v934_v18 }
 0x1fc   :  { %v747_v16 = vpop.permute.xlu1 %746  ;;  %v3061_v9 = vpop.permute.xlu0 %845 }
 0x1fd   :  { %v945_v26 = vrot.slane %v747_v16, %v3080_v36 }
 0x1ff   :  { %v950_v47 = vsel %vm940_vm2, %v949_v49, %v945_v26 }
 0x200   :  { %v837_v23 = vpop.permute.xlu1 %836  ;;  %v756_v32 = vpop.permute.xlu0 %755 }
 0x201   :  { %v1080_v19 = vrot.slane %v837_v23, %v3080_v36  ;;  %v958_v16 = vrot.slane %v756_v32, %v3083_v52  ;;  %v1093_v23 = vrot.slane %v3061_v9, %v3083_v52  ;;  %v1222_v32 = vsel %vm1221_vm3, %v950_v47, %v941_v53 }
 0x204   :  { %v843_v62 = vpop.permute.xlu1 %842  ;;  %v3063_v24 = vpop.permute.xlu0 %851 }
 0x205   :  { %v1089_v6 = vrot.slane %v843_v62, %v3080_v36 }
 0x207   :  { %v1094_v47 = vsel %vm940_vm2, %v1093_v23, %v1089_v6 }
 0x208   :  { %v753_v4 = vpop.permute.xlu1 %752  ;;  %v762_v12 = vpop.permute.xlu0 %761 }
 0x209   :  { %v954_v13 = vrot.slane %v753_v4, %v3080_v36  ;;  %v1084_v4 = vrot.slane %v840_v7, %v3083_v52  ;;  %v967_v49 = vrot.slane %v762_v12, %v3083_v52 }
 0x20b   :  { %v959_v8 = vsel %vm940_vm2, %v958_v16, %v954_v13 }
 0x20c   :  { %v3065_v30 = vpop.permute.xlu1 %848  ;;  %v3067_v15 = vpop.permute.xlu0 %857 }
 0x20d   :  { %v1098_v18 = vrot.slane %v3065_v30, %v3080_v36  ;;  %v1224_v30 = vsel %vm1223_vm4, %v959_v8, %v1222_v32 }
 0x210   :  { %v759_v3 = vpop.permute.xlu1 %758  ;;  %v768_v42 = vpop.permute.xlu0 %767 }
 0x211   :  { %v963_v14 = vrot.slane %v759_v3, %v3080_v36  ;;  %v1085_v3 = vsel %vm940_vm2, %v1084_v4, %v1080_v19  ;;  %v976_v9 = vrot.slane %v768_v42, %v3083_v52  ;;  %v1102_v19 = vrot.slane %v3063_v24, %v3083_v52 }
 0x212   :  { %v1242_v32 = vsel %vm1221_vm3, %v1094_v47, %v1085_v3 }
 0x213   :  { %v968_v62 = vsel %vm940_vm2, %v967_v49, %v963_v14  ;;  %v1111_v14 = vrot.slane %v3067_v15, %v3083_v52 }
 0x214   :  { %v3069_v54 = vpop.permute.xlu1 %854  ;;  %v3071_v41 = vpop.permute.xlu0 %863  ;;  %v1226_v6 = vsel %vm1225_vm5, %v968_v62, %v1224_v30 }
 0x215   :  { %v1107_v13 = vrot.slane %v3069_v54, %v3080_v36  ;;  %v1120_v15 = vrot.slane %v3071_v41, %v3083_v52 }
 0x218   :  { %v765_v2 = vpop.permute.xlu1 %764  ;;  %v774_v58 = vpop.permute.xlu0 %773 }
 0x219   :  { %v972_v26 = vrot.slane %v765_v2, %v3080_v36 }
 0x21b   :  { %v977_v42 = vsel %vm940_vm2, %v976_v9, %v972_v26 }
 0x21c   :  { %v3073_v1 = vpop.permute.xlu1 %860  ;;  %v3075_v57 = vpop.permute.xlu0 %869  ;;  %v1228_v8 = vsel %vm1227_vm6, %v977_v42, %v1226_v6 }
 0x21d   :  { %v1116_v54 = vrot.slane %v3073_v1, %v3080_v36  ;;  %v1129_v49 = vrot.slane %v3075_v57, %v3083_v52 }
 0x21f   :  { %v1121_v41 = vsel %vm940_vm2, %v1120_v15, %v1116_v54 }
 0x220   :  { %v771_v48 = vpop.permute.xlu1 %770  ;;  %v780_v35 = vpop.permute.xlu0 %779 }
 0x221   :  { %v981_v21 = vrot.slane %v771_v48, %v3080_v36  ;;  %v985_v48 = vrot.slane %v774_v58, %v3083_v52  ;;  %v994_v16 = vrot.slane %v780_v35, %v3083_v52  ;;  %v1112_v58 = vsel %vm940_vm2, %v1111_v14, %v1107_v13 }
 0x223   :  { %v986_v24 = vsel %vm940_vm2, %v985_v48, %v981_v21 }
 0x224   :  { %v3086_v27 = vpop.permute.xlu1 %866  ;;  %v3088_v17 = vpop.permute.xlu0 %875  ;;  %v1230_v21 = vsel %vm1229_vm7, %v986_v24, %v1228_v8 }
 0x225   :  { %v1125_v53 = vrot.slane %v3086_v27, %v3080_v36 }
 0x227   :  { %v1130_v9 = vsel %vm940_vm2, %v1129_v49, %v1125_v53 }
 0x228   :  { %v777_v61 = vpop.permute.xlu1 %776  ;;  %v786_v5 = vpop.permute.xlu0 %785 }
 0x229   :  { %v990_v7 = vrot.slane %v777_v61, %v3080_v36  ;;  %v1103_v61 = vsel %vm940_vm2, %v1102_v19, %v1098_v18  ;;  %v1003_v26 = vrot.slane %v786_v5, %v3083_v52  ;;  %v1138_v18 = vrot.slane %v3088_v17, %v3083_v52 }
 0x22a   :  { %v1243_v62 = vsel %vm1223_vm4, %v1103_v61, %v1242_v32 }
 0x22b   :  { %v995_v4 = vsel %vm940_vm2, %v994_v16, %v990_v7  ;;  %v1244_v5 = vsel %vm1225_vm5, %v1112_v58, %v1243_v62 }
 0x22c   :  { %v873_v2 = vpop.permute.xlu1 %872  ;;  %v882_v12 = vpop.permute.xlu0 %881  ;;  %v1232_v57 = vsel %vm1231_vm8, %v995_v4, %v1230_v21  ;;  %v1245_v17 = vsel %vm1227_vm6, %v1121_v41, %v1244_v5 }
 0x22d   :  { %v1134_v1 = vrot.slane %v873_v2, %v3080_v36  ;;  %v1147_v19 = vrot.slane %v882_v12, %v3083_v52  ;;  %v1246_v14 = vsel %vm1229_vm7, %v1130_v9, %v1245_v17 }
 0x22f   :  { %v1139_v7 = vsel %vm940_vm2, %v1138_v18, %v1134_v1 }
 0x230   :  { %v783_v23 = vpop.permute.xlu1 %782  ;;  %v3137_v35 = vpop.permute.xlu0 %791  ;;  %v1247_v54 = vsel %vm1231_vm8, %v1139_v7, %v1246_v14 }
 0x231   :  { %v999_v27 = vrot.slane %v783_v23, %v3080_v36  ;;  %v1012_v14 = vrot.slane %v3137_v35, %v3083_v52 }
 0x233   :  { %v1004_v13 = vsel %vm940_vm2, %v1003_v26, %v999_v27 }
 0x234   :  { %v879_v3 = vpop.permute.xlu1 %878  ;;  %v798_v2 = vpop.permute.xlu0 %797  ;;  %v3156_v47 = vsel %vm1233_vm9, %v1004_v13, %v1232_v57 }
 0x235   :  { %4087 = vst [vmem:[#allocation56_spill] sm:$0xff] %v3156_v47  ;;  %v1143_v30 = vrot.slane %v879_v3, %v3080_v36  ;;  %v1261_v48 = vsel %vm1260_vm10, %v3156_v47, inf }
 0x236   :  { %1262 = vmin.xlane.f32.xlu1 %v1261_v48 }
 0x237   :  { %v1148_v42 = vsel %vm940_vm2, %v1147_v19, %v1143_v30  ;;  %v1021_v19 = vrot.slane %v798_v2, %v3083_v52 }
 0x238   :  { %v789_v16 = vpop.permute.xlu1 %788  ;;  %v888_v61 = vpop.permute.xlu0 %887  ;;  %v3167_v6 = vsel %vm1233_vm9, %v1148_v42, %v1247_v54 }
 0x239   :  { %4088 = vst [vmem:[#allocation57_spill] sm:$0xff] %v3167_v6  ;;  %v1267_v12 = vsel %vm1260_vm10, %v3167_v6, inf  ;;  %v1008_v17 = vrot.slane %v789_v16, %v3080_v36  ;;  %v1156_v16 = vrot.slane %v888_v61, %v3083_v52 }
 0x23a   :  { %1268 = vmin.xlane.f32.xlu0 %v1267_v12 }
 0x23b   :  { %v1013_v47 = vsel %vm940_vm2, %v1012_v14, %v1008_v17 }
 0x23c   :  { %v795_v24 = vpop.permute.xlu1 %794  ;;  %v894_v53 = vpop.permute.xlu0 %893 }
 0x23d   :  { %v1017_v7 = vrot.slane %v795_v24, %v3080_v36 }
 0x23f   :  { %v1022_v54 = vsel %vm940_vm2, %v1021_v19, %v1017_v7 }
 0x240   :  { %v885_v58 = vpop.permute.xlu1 %884  ;;  %v804_v15 = vpop.permute.xlu0 %803  ;;  %v1235_v7 = vsel %vm1221_vm3, %v1022_v54, %v1013_v47 }
 0x241   :  { %v1152_v42 = vrot.slane %v885_v58, %v3080_v36  ;;  %v1030_v12 = vrot.slane %v804_v15, %v3083_v52 }
 0x243   :  { %v1157_v15 = vsel %vm940_vm2, %v1156_v16, %v1152_v42 }
 0x244   :  { %v891_v4 = vpop.permute.xlu1 %890  ;;  %v900_v1 = vpop.permute.xlu0 %899 }
 0x245   :  { %v1161_v2 = vrot.slane %v891_v4, %v3080_v36  ;;  %v1174_v47 = vrot.slane %v900_v1, %v3083_v52 }
 0x248   :  { %v801_v23 = vpop.permute.xlu1 %800  ;;  %v810_v8 = vpop.permute.xlu0 %809 }
 0x249   :  { %v1026_v30 = vrot.slane %v801_v23, %v3080_v36  ;;  %v1165_v23 = vrot.slane %v894_v53, %v3083_v52  ;;  %v1039_v35 = vrot.slane %v810_v8, %v3083_v52 }
 0x24b   :  { %v1031_v46 = vsel %vm940_vm2, %v1030_v12, %v1026_v30 }
 0x24c   :  { %v897_v49 = vpop.permute.xlu1 %896  ;;  %v906_v26 = vpop.permute.xlu0 %905  ;;  %v1236_v14 = vsel %vm1223_vm4, %v1031_v46, %v1235_v7 }
 0x250   :  { %v807_v27 = vpop.permute.xlu1 %806  ;;  %v816_v32 = vpop.permute.xlu0 %815 }
 0x251   :  { %v1035_v6 = vrot.slane %v807_v27, %v3080_v36  ;;  %v1170_v27 = vrot.slane %v897_v49, %v3080_v36  ;;  %v1048_v4 = vrot.slane %v816_v32, %v3083_v52 }
 0x253   :  { %v1040_v61 = vsel %vm940_vm2, %v1039_v35, %v1035_v6  ;;  %v1175_v42 = vsel %vm940_vm2, %v1174_v47, %v1170_v27 }
 0x254   :  { %v903_v41 = vpop.permute.xlu1 %902  ;;  %v912_v18 = vpop.permute.xlu0 %911  ;;  %v1237_v54 = vsel %vm1225_vm5, %v1040_v61, %v1236_v14 }
 0x255   :  { %v1179_v53 = vrot.slane %v903_v41, %v3080_v36 }
 0x258   :  { %v813_v21 = vpop.permute.xlu1 %812  ;;  %v822_v62 = vpop.permute.xlu0 %821 }
 0x259   :  { %v1044_v58 = vrot.slane %v813_v21, %v3080_v36  ;;  %v1166_v21 = vsel %vm940_vm2, %v1165_v23, %v1161_v2  ;;  %v1057_v49 = vrot.slane %v822_v62, %v3083_v52  ;;  %v1192_v62 = vrot.slane %v912_v18, %v3083_v52 }
 0x25a   :  { %v1249_v35 = vsel %vm1221_vm3, %v1166_v21, %v1157_v15 }
 0x25b   :  { %v1049_v6 = vsel %vm940_vm2, %v1048_v4, %v1044_v58  ;;  %v1250_v27 = vsel %vm1223_vm4, %v1175_v42, %v1249_v35 }
 0x25c   :  { %v909_v9 = vpop.permute.xlu1 %908  ;;  %v918_v13 = vpop.permute.xlu0 %917 }
 0x25d   :  { %v1188_v32 = vrot.slane %v909_v9, %v3080_v36  ;;  %v1238_v9 = vsel %vm1227_vm6, %v1049_v6, %v1237_v54 }
 0x260   :  { %v819_v57 = vpop.permute.xlu1 %818  ;;  %v828_v5 = vpop.permute.xlu0 %827 }
 0x261   :  { %v1053_v17 = vrot.slane %v819_v57, %v3080_v36  ;;  %v1183_v57 = vrot.slane %v906_v26, %v3083_v52  ;;  %v1066_v41 = vrot.slane %v828_v5, %v3083_v52  ;;  %v1201_v5 = vrot.slane %v918_v13, %v3083_v52 }
 0x263   :  { %v1058_v12 = vsel %vm940_vm2, %v1057_v49, %v1053_v17  ;;  %v1184_v46 = vsel %vm940_vm2, %v1183_v57, %v1179_v53 }
 0x264   :  { %v915_v3 = vpop.permute.xlu1 %914  ;;  %v924_v48 = vpop.permute.xlu0 %923  ;;  %v1239_v7 = vsel %vm1229_vm7, %v1058_v12, %v1238_v9  ;;  %v1251_v4 = vsel %vm1225_vm5, %v1184_v46, %v1250_v27  ;;  %v4093_v27 = vld [vmem:[#allocation12_spill] sm:$0xff] }
 0x265   :  { %v1197_v1 = vrot.slane %v915_v3, %v3080_v36  ;;  %v1193_v3 = vsel %vm940_vm2, %v1192_v62, %v1188_v32  ;;  %v1210_v58 = vrot.slane %v924_v48, %v3083_v52 }
 0x266   :  { %v1252_v48 = vsel %vm1227_vm6, %v1193_v3, %v1251_v4  ;;  %v4090_v3 = vld [vmem:[#allocation11_spill] sm:$0xff] }
 0x267   :  { %v1202_v17 = vsel %vm940_vm2, %v1201_v5, %v1197_v1 }
 0x268   :  { %v825_v24 = vpop.permute.xlu1 %824  ;;  %v834_v30 = vpop.permute.xlu0 %833  ;;  %v1253_v47 = vsel %vm1229_vm7, %v1202_v17, %v1252_v48  ;;  %v4094_v17 = vld [vmem:[#allocation8_spill] sm:$0xff] }
 0x269   :  { %v1062_v19 = vrot.slane %v825_v24, %v3080_v36  ;;  %v1075_v2 = vrot.slane %v834_v30, %v3083_v52 }
 0x26b   :  { %v1067_v26 = vsel %vm940_vm2, %v1066_v41, %v1062_v19 }
 0x26c   :  { %v921_v8 = vpop.permute.xlu1 %920  ;;  %v930_v18 = vpop.permute.xlu0 %929  ;;  %v1240_v13 = vsel %vm1231_vm8, %v1067_v26, %v1239_v7  ;;  %v4092_v7 = vld [vmem:[#allocation13_spill] sm:$0xff] }
 0x26d   :  { %v1206_v24 = vrot.slane %v921_v8, %v3080_v36  ;;  %v1219_v30 = vrot.slane %v930_v18, %v3083_v52 }
 0x26f   :  { %v1211_v53 = vsel %vm940_vm2, %v1210_v58, %v1206_v24  ;;  %v4091_v58 = vld [vmem:[#allocation10_spill] sm:$0xff] }
 0x270   :  { %v831_v16 = vpop.permute.xlu1 %830  ;;  %v1254_v49 = vsel %vm1231_vm8, %v1211_v53, %v1253_v47  ;;  %v4095_v53 = vld [vmem:[#allocation15_spill] sm:$0xff]  ;;  %v4098_v47 = vld [vmem:[#allocation16_spill] sm:$0xff] }
 0x271   :  { %v1071_v23 = vrot.slane %v831_v16, %v3080_v36 }
 0x273   :  { %v1076_v61 = vsel %vm940_vm2, %v1075_v2, %v1071_v23  ;;  %v4089_v23 = vld [vmem:[#allocation7_spill] sm:$0xff] }
 0x274   :  { %v927_v15 = vpop.permute.xlu1 %926  ;;  %v3227_v19 = vsel %vm1233_vm9, %v1076_v61, %v1240_v13 }
 0x275   :  { %v1215_v8 = vrot.slane %v927_v15, %v3080_v36  ;;  %v1264_v21 = vsel %vm1260_vm10, %v3227_v19, inf  ;;  %v4096_v15 = vld [vmem:[#allocation14_spill] sm:$0xff] }
 0x276   :  { %1265 = vmin.xlane.f32.xlu0 %v1264_v21  ;;  %v4097_v21 = vld [vmem:[#allocation17_spill] sm:$0xff] }
 0x277   :  { %v1220_v14 = vsel %vm940_vm2, %v1219_v30, %v1215_v8 }
 0x278   :  { %v3238_v57 = vsel %vm1233_vm9, %v1220_v14, %v1254_v49  ;;  %v4099_v14 = vld [vmem:[#allocation9_spill] sm:$0xff] }
 0x279   :  { %v1270_v6 = vsel %vm1260_vm10, %v3238_v57, inf }
 0x27a   :  { %1271 = vmin.xlane.f32.xlu0 %v1270_v6 }
 0x2c3   :  { %v3242_v32 = vpop.xlane.xlu1 %1262 }
 0x2c4   :  { %v1280_v41 = vrot.slane %v3242_v32, %v2738_v20  ;;  %v1284_v42 = vrot.slane %v3242_v32, %v2742_v31  ;;  %v1292_v16 = vrot.slane %v3242_v32, %v2753_v40  ;;  %v1296_v5 = vrot.slane %v3242_v32, %v2758_v43 }
 0x2c5   :  { %v1300_v35 = vrot.slane %v3242_v32, %v4089_v23  ;;  %v1304_v61 = vrot.slane %v3242_v32, %v4094_v17  ;;  %v1308_v49 = vrot.slane %v3242_v32, %v4099_v14 }
 0x2c6   :  { %vm1437_vm11 = vcmp.eq.f32.partialorder %v2806_v22, %v1280_v41  ;;  %vm1440_vm12 = vcmp.eq.f32.partialorder %v2810_v25, %v1284_v42  ;;  %vm1438_vm13 = vcmp.eq.f32.partialorder %v2814_v28, %v1280_v41  ;;  %vm1439_vm15 = vcmp.eq.f32.partialorder %v2822_v33, %v1284_v42  ;;  %v4100_v42 = vld [vmem:[#allocation19_spill] sm:$0xff] }
 0x2c7   :  { %v3250_v54 = vpop.xlane.xlu0 %1268  ;;  %v1508_v12 = vsel %vm1437_vm11, %v2798_v10, 16  ;;  %v1511_v1 = vsel %vm1440_vm12, %v2800_v11, 16  ;;  %v1509_v22 = vsel %vm1438_vm13, %v2800_v11, 16  ;;  %v1288_v28 = vrot.slane %v3242_v32, %v2748_v37  ;;  %v4102_v32 = vld [vmem:[#allocation21_spill] sm:$0xff] }
 0x2c8   :  { %1573 = vperm.xlu1 %2635, %v1508_v12   ;;  %1582 = vperm.xlu0 %2634, %v1511_v1   ;;  %v1344_v46 = vrot.slane %v3250_v54, %v2738_v20  ;;  %v1348_v62 = vrot.slane %v3250_v54, %v2742_v31  ;;  %v1510_v26 = vsel %vm1439_vm15, %v2798_v10, 16  ;;  %vm1444_vm15 = vcmp.eq.f32.partialorder %v2849_v51, %v1292_v16  ;;  %v4101_v12 = vld [vmem:[#allocation18_spill] sm:$0xff] }
 0x2c9   :  { %vm1442_vm11 = vcmp.eq.f32.partialorder %v2833_v39, %v1288_v28  ;;  %v1356_v9 = vrot.slane %v3250_v54, %v2753_v40  ;;  %v1360_v2 = vrot.slane %v3250_v54, %v2758_v43  ;;  %v1364_v18 = vrot.slane %v3250_v54, %v4089_v23 }
 0x2ca   :  { %vm1470_vm14 = vcmp.eq.f32.partialorder %v2817_v29, %v1344_v46  ;;  %vm1472_vm0 = vcmp.eq.f32.partialorder %v2825_v34, %v1348_v62  ;;  %vm1469_vm12 = vcmp.eq.f32.partialorder %v2830_v38, %v1344_v46  ;;  %v1352_v29 = vrot.slane %v3250_v54, %v2748_v37 }
 0x2cb   :  { %v1541_v25 = vsel %vm1470_vm14, %v2800_v11, 16  ;;  %v1543_v24 = vsel %vm1472_vm0, %v2800_v11, 16  ;;  %v1513_v33 = vsel %vm1442_vm11, %v2800_v11, 16  ;;  %v1540_v34 = vsel %vm1469_vm12, %v2798_v10, 16 }
 0x2cc   :  { %1576 = vperm.xlu1 %2635, %v1509_v22   ;;  %1672 = vperm.xlu0 %2634, %v1541_v25   ;;  %vm1474_vm13 = vcmp.eq.f32.partialorder %v2841_v45, %v1352_v29  ;;  %vm1471_vm14 = vcmp.eq.f32.partialorder %v2838_v44, %v1348_v62  ;;  %vm1441_vm0 = vcmp.eq.f32.partialorder %v2846_v50, %v1288_v28  ;;  %v1515_v45 = vsel %vm1444_vm15, %v2800_v11, 16  ;;  %v4103_v22 = vld [vmem:[#allocation20_spill] sm:$0xff] }
 0x2cd   :  { %v1545_v39 = vsel %vm1474_vm13, %v2800_v11, 16  ;;  %v1542_v38 = vsel %vm1471_vm14, %v2798_v10, 16  ;;  %v1512_v44 = vsel %vm1441_vm0, %v2798_v10, 16  ;;  %vm1476_vm11 = vcmp.eq.f32.partialorder %v2857_v56, %v1356_v9 }
 0x2ce   :  { %vm1473_vm12 = vcmp.eq.f32.partialorder %v2854_v55, %v1352_v29  ;;  %v1547_v51 = vsel %vm1476_vm11, %v2800_v11, 16  ;;  %vm1446_vm13 = vcmp.eq.f32.partialorder %v2865_v60, %v1296_v5  ;;  %vm1443_vm14 = vcmp.eq.f32.partialorder %v2862_v59, %v1292_v16  ;;  %v4105_v29 = vld [vmem:[#allocation24_spill] sm:$0xff]  ;;  %v4106_v16 = vld [vmem:[#allocation23_spill] sm:$0xff] }
 0x2cf   :  { %v1544_v50 = vsel %vm1473_vm12, %v2798_v10, 16  ;;  %v1517_v56 = vsel %vm1446_vm13, %v2800_v11, 16  ;;  %v1514_v55 = vsel %vm1443_vm14, %v2798_v10, 16  ;;  %vm1478_vm15 = vcmp.eq.f32.partialorder %v2873_v0, %v1360_v2 }
 0x2d0   :  { %1579 = vperm.xlu1 %2635, %v1510_v26   ;;  %1678 = vperm.xlu0 %2634, %v1543_v24   ;;  %vm1475_vm0 = vcmp.eq.f32.partialorder %v2870_v63, %v1356_v9  ;;  %v1549_v60 = vsel %vm1478_vm15, %v2800_v11, 16  ;;  %vm1448_vm11 = vcmp.eq.f32.partialorder %v4090_v3, %v1300_v35  ;;  %vm1445_vm12 = vcmp.eq.f32.partialorder %v4091_v58, %v1296_v5  ;;  %v4104_v26 = vld [vmem:[#allocation22_spill] sm:$0xff] }
 0x2d1   :  { %v1546_v59 = vsel %vm1475_vm0, %v2798_v10, 16  ;;  %v1519_v0 = vsel %vm1448_vm11, %v2800_v11, 16  ;;  %v1516_v63 = vsel %vm1445_vm12, %v2798_v10, 16  ;;  %vm1480_vm13 = vcmp.eq.f32.partialorder %v4092_v7, %v1364_v18  ;;  %v4112_v3 = vld [vmem:[#allocation30_spill] sm:$0xff]  ;;  %v4114_v7 = vld [vmem:[#allocation32_spill] sm:$0xff] }
 0x2d2   :  { %vm1477_vm14 = vcmp.eq.f32.partialorder %v4093_v27, %v1360_v2  ;;  %v1551_v13 = vsel %vm1480_vm13, %v2800_v11, 16  ;;  %vm1450_vm15 = vcmp.eq.f32.partialorder %v4095_v53, %v1304_v61  ;;  %vm1447_vm0 = vcmp.eq.f32.partialorder %v4096_v15, %v1300_v35  ;;  %v4109_v2 = vld [vmem:[#allocation28_spill] sm:$0xff]  ;;  %v4116_v53 = vld [vmem:[#allocation34_spill] sm:$0xff] }
 0x2d3   :  { %v1548_v4 = vsel %vm1477_vm14, %v2798_v10, 16  ;;  %v1368_v48 = vrot.slane %v3250_v54, %v4094_v17  ;;  %v1521_v30 = vsel %vm1450_vm15, %v2800_v11, 16  ;;  %v1518_v8 = vsel %vm1447_vm0, %v2798_v10, 16 }
 0x2d4   :  { %1588 = vperm.xlu0 %2634, %v1513_v33   ;;  %1669 = vperm.xlu1 %2635, %v1540_v34   ;;  %vm1479_vm12 = vcmp.eq.f32.partialorder %v4098_v47, %v1364_v18  ;;  %vm1452_vm13 = vcmp.eq.f32.partialorder %v4100_v42, %v1308_v49  ;;  %vm1449_vm14 = vcmp.eq.f32.partialorder %v4101_v12, %v1304_v61 }
 0x2d5   :  { %vm1482_vm11 = vcmp.eq.f32.partialorder %v4097_v21, %v1368_v48  ;;  %v1550_v41 = vsel %vm1479_vm12, %v2798_v10, 16  ;;  %v1372_v1 = vrot.slane %v3250_v54, %v4099_v14  ;;  %v1523_v46 = vsel %vm1452_vm13, %v2800_v11, 16 }
 0x2d6   :  { %v1553_v6 = vsel %vm1482_vm11, %v2800_v11, 16  ;;  %v1520_v62 = vsel %vm1449_vm14, %v2798_v10, 16  ;;  %vm1481_vm0 = vcmp.eq.f32.partialorder %v4103_v22, %v1368_v48  ;;  %vm1451_vm11 = vcmp.eq.f32.partialorder %v4104_v26, %v1308_v49 }
 0x2d7   :  { %vm1484_vm15 = vcmp.eq.f32.partialorder %v4102_v32, %v1372_v1  ;;  %v1552_v28 = vsel %vm1481_vm0, %v2798_v10, 16  ;;  %v1522_v54 = vsel %vm1451_vm11, %v2798_v10, 16  ;;  %vm1483_vm12 = vcmp.eq.f32.partialorder %v4105_v29, %v1372_v1 }
 0x2d8   :  { %1684 = vperm.xlu0 %2634, %v1545_v39   ;;  %1675 = vperm.xlu1 %2635, %v1542_v38   ;;  %v1555_v25 = vsel %vm1484_vm15, %v2800_v11, 16  ;;  %v1554_v38 = vsel %vm1483_vm12, %v2798_v10, 16 }
 0x2dc   :  { %1594 = vperm.xlu0 %2634, %v1515_v45   ;;  %1585 = vperm.xlu1 %2635, %v1512_v44   ;;  %v4107_v45 = vld [vmem:[#allocation25_spill] sm:$0xff]  ;;  %v4108_v44 = vld [vmem:[#allocation26_spill] sm:$0xff] }
 0x2e0   :  { %1690 = vperm.xlu0 %2634, %v1547_v51   ;;  %1681 = vperm.xlu1 %2635, %v1544_v50  }
 0x2e4   :  { %1600 = vperm.xlu0 %2634, %v1517_v56   ;;  %1591 = vperm.xlu1 %2635, %v1514_v55   ;;  %v4110_v56 = vld [vmem:[#allocation27_spill] sm:$0xff] }
 0x2e8   :  { %1696 = vperm.xlu0 %2634, %v1549_v60   ;;  %1687 = vperm.xlu1 %2635, %v1546_v59   ;;  %v4111_v59 = vld [vmem:[#allocation29_spill] sm:$0xff] }
 0x2ec   :  { %1606 = vperm.xlu0 %2634, %v1519_v0   ;;  %1597 = vperm.xlu1 %2635, %v1516_v63   ;;  %v4113_v63 = vld [vmem:[#allocation31_spill] sm:$0xff] }
 0x2f0   :  { %1702 = vperm.xlu0 %2634, %v1551_v13   ;;  %1693 = vperm.xlu1 %2635, %v1548_v4   ;;  %v4115_v4 = vld [vmem:[#allocation33_spill] sm:$0xff] }
 0x2f4   :  { %1612 = vperm.xlu0 %2634, %v1521_v30   ;;  %1603 = vperm.xlu1 %2635, %v1518_v8   ;;  %v4118_v8 = vld [vmem:[#allocation36_spill] sm:$0xff] }
 0x2f8   :  { %1708 = vperm.xlu0 %2634, %v1553_v6   ;;  %1699 = vperm.xlu1 %2635, %v1550_v41   ;;  %v4119_v6 = vld [vmem:[#allocation37_spill] sm:$0xff]  ;;  %v4120_v41 = vld [vmem:[#allocation38_spill] sm:$0xff] }
 0x2fc   :  { %1618 = vperm.xlu0 %2634, %v1523_v46   ;;  %1609 = vperm.xlu1 %2635, %v1520_v62   ;;  %v4122_v46 = vld [vmem:[#allocation40_spill] sm:$0xff] }
 0x300   :  { %1714 = vperm.xlu0 %2634, %v1555_v25   ;;  %1705 = vperm.xlu1 %2635, %v1552_v28   ;;  %v4123_v25 = vld [vmem:[#allocation41_spill] sm:$0xff]  ;;  %v4124_v28 = vld [vmem:[#allocation42_spill] sm:$0xff] }
 0x303   :  { %v3339_v24 = vpop.xlane.xlu0 %1265 }
 0x304   :  { %1615 = vperm.xlu1 %2635, %v1522_v54   ;;  %v1312_v33 = vrot.slane %v3339_v24, %v2738_v20  ;;  %v1316_v34 = vrot.slane %v3339_v24, %v2742_v31  ;;  %v1320_v58 = vrot.slane %v3339_v24, %v2748_v37  ;;  %v1324_v15 = vrot.slane %v3339_v24, %v2753_v40 }
 0x305   :  { %v1328_v42 = vrot.slane %v3339_v24, %v2758_v43  ;;  %v1332_v26 = vrot.slane %v3339_v24, %v4089_v23 }
 0x306   :  { %vm1454_vm13 = vcmp.eq.f32.partialorder %v4106_v16, %v1312_v33  ;;  %vm1456_vm14 = vcmp.eq.f32.partialorder %v4107_v45, %v1316_v34  ;;  %vm1453_vm15 = vcmp.eq.f32.partialorder %v4108_v44, %v1312_v33  ;;  %vm1455_vm0 = vcmp.eq.f32.partialorder %v4109_v2, %v1316_v34  ;;  %v4126_v33 = vld [vmem:[#allocation44_spill] sm:$0xff]  ;;  %v4128_v45 = vld [vmem:[#allocation46_spill] sm:$0xff] }
 0x307   :  { %v3348_v39 = vpop.xlane.xlu0 %1271  ;;  %v1525_v9 = vsel %vm1454_vm13, %v2800_v11, 16  ;;  %v1527_v51 = vsel %vm1456_vm14, %v2800_v11, 16  ;;  %v1524_v50 = vsel %vm1453_vm15, %v2798_v10, 16  ;;  %v1526_v35 = vsel %vm1455_vm0, %v2798_v10, 16 }
 0x308   :  { %1711 = vperm.xlu1 %2635, %v1554_v38   ;;  %1624 = vperm.xlu0 %2634, %v1525_v9   ;;  %v1376_v5 = vrot.slane %v3348_v39, %v2738_v20  ;;  %v1380_v55 = vrot.slane %v3348_v39, %v2742_v31  ;;  %vm1458_vm14 = vcmp.eq.f32.partialorder %v4113_v63, %v1320_v58  ;;  %v4127_v9 = vld [vmem:[#allocation45_spill] sm:$0xff] }
 0x309   :  { %v1384_v27 = vrot.slane %v3348_v39, %v2748_v37  ;;  %v1529_v61 = vsel %vm1458_vm14, %v2800_v11, 16  ;;  %v4117_v37 = vld [vmem:[#allocation35_spill] sm:$0xff]  ;;  %v1388_v21 = vrot.slane %v3348_v39, %v2753_v40  ;;  %v1392_v62 = vrot.slane %v3348_v39, %v2758_v43 }
 0x30a   :  { %vm1486_vm11 = vcmp.eq.f32.partialorder %v4110_v56, %v1376_v5  ;;  %vm1488_vm12 = vcmp.eq.f32.partialorder %v4111_v59, %v1380_v55  ;;  %vm1485_vm13 = vcmp.eq.f32.partialorder %v4112_v3, %v1376_v5  ;;  %vm1487_vm15 = vcmp.eq.f32.partialorder %v4114_v7, %v1380_v55  ;;  %v4121_v40 = vld [vmem:[#allocation39_spill] sm:$0xff] }
 0x30b   :  { %v1557_v60 = vsel %vm1486_vm11, %v2800_v11, 16  ;;  %v1559_v18 = vsel %vm1488_vm12, %v2800_v11, 16  ;;  %v1556_v0 = vsel %vm1485_vm13, %v2798_v10, 16  ;;  %v1558_v13 = vsel %vm1487_vm15, %v2798_v10, 16  ;;  %v4125_v43 = vld [vmem:[#allocation43_spill] sm:$0xff] }
 0x30c   :  { %1630 = vperm.xlu0 %2634, %v1527_v51   ;;  %1621 = vperm.xlu1 %2635, %v1524_v50   ;;  %vm1490_vm0 = vcmp.eq.f32.partialorder %v4115_v4, %v1384_v27  ;;  %vm1457_vm11 = vcmp.eq.f32.partialorder %v4116_v53, %v1320_v58  ;;  %vm1460_vm12 = vcmp.eq.f32.partialorder %v4117_v37, %v1324_v15  ;;  %v4130_v50 = vld [vmem:[#allocation48_spill] sm:$0xff]  ;;  %v4137_v4 = vld [vmem:[#allocation55_spill] sm:$0xff] }
 0x30d   :  { %v1561_v48 = vsel %vm1490_vm0, %v2800_v11, 16  ;;  %v1528_v30 = vsel %vm1457_vm11, %v2798_v10, 16  ;;  %vm1489_vm13 = vcmp.eq.f32.partialorder %v4118_v8, %v1384_v27  ;;  %v1531_v47 = vsel %vm1460_vm12, %v2800_v11, 16  ;;  %v4136_v27 = vld [vmem:[#allocation54_spill] sm:$0xff] }
 0x30e   :  { %v1560_v49 = vsel %vm1489_vm13, %v2798_v10, 16  ;;  %vm1492_vm14 = vcmp.eq.f32.partialorder %v4119_v6, %v1388_v21  ;;  %vm1459_vm15 = vcmp.eq.f32.partialorder %v4120_v41, %v1324_v15  ;;  %vm1462_vm0 = vcmp.eq.f32.partialorder %v4121_v40, %v1328_v42 }
 0x30f   :  { %v1563_v12 = vsel %vm1492_vm14, %v2800_v11, 16  ;;  %v1530_v1 = vsel %vm1459_vm15, %v2798_v10, 16  ;;  %vm1491_vm11 = vcmp.eq.f32.partialorder %v4122_v46, %v1388_v21  ;;  %v1533_v32 = vsel %vm1462_vm0, %v2800_v11, 16 }
 0x310   :  { %1627 = vperm.xlu1 %2635, %v1526_v35   ;;  %1720 = vperm.xlu0 %2634, %v1557_v60   ;;  %v1562_v22 = vsel %vm1491_vm11, %v2798_v10, 16  ;;  %vm1494_vm12 = vcmp.eq.f32.partialorder %v4123_v25, %v1392_v62  ;;  %vm1461_vm13 = vcmp.eq.f32.partialorder %v4124_v28, %v1328_v42  ;;  %vm1464_vm14 = vcmp.eq.f32.partialorder %v4125_v43, %v1332_v26  ;;  %v4131_v35 = vld [vmem:[#allocation49_spill] sm:$0xff]  ;;  %v4132_v60 = vld [vmem:[#allocation50_spill] sm:$0xff] }
 0x311   :  { %v1565_v54 = vsel %vm1494_vm12, %v2800_v11, 16  ;;  %v1532_v29 = vsel %vm1461_vm13, %v2798_v10, 16  ;;  %vm1493_vm15 = vcmp.eq.f32.partialorder %v4126_v33, %v1392_v62  ;;  %v1396_v34 = vrot.slane %v3348_v39, %v4089_v23  ;;  %v4129_v23 = vld [vmem:[#allocation47_spill] sm:$0xff] }
 0x312   :  { %v1535_v16 = vsel %vm1464_vm14, %v2800_v11, 16  ;;  %v1564_v38 = vsel %vm1493_vm15, %v2798_v10, 16  ;;  %vm1463_vm11 = vcmp.eq.f32.partialorder %v4128_v45, %v1332_v26  ;;  %v1336_v44 = vrot.slane %v3339_v24, %v4094_v17 }
 0x313   :  { %vm1496_vm0 = vcmp.eq.f32.partialorder %v4127_v9, %v1396_v34  ;;  %v1534_v51 = vsel %vm1463_vm11, %v2798_v10, 16  ;;  %vm1495_vm13 = vcmp.eq.f32.partialorder %v4130_v50, %v1396_v34  ;;  %v1400_v2 = vrot.slane %v3348_v39, %v4094_v17  ;;  %v4133_v17 = vld [vmem:[#allocation51_spill] sm:$0xff] }
 0x314   :  { %1726 = vperm.xlu0 %2634, %v1559_v18   ;;  %1717 = vperm.xlu1 %2635, %v1556_v0   ;;  %v1567_v5 = vsel %vm1496_vm0, %v2800_v11, 16  ;;  %vm1466_vm12 = vcmp.eq.f32.partialorder %v4129_v23, %v1336_v44  ;;  %v1566_v55 = vsel %vm1495_vm13, %v2798_v10, 16  ;;  %vm1465_vm15 = vcmp.eq.f32.partialorder %v4132_v60, %v1336_v44  ;;  %v4134_v18 = vld [vmem:[#allocation52_spill] sm:$0xff] }
 0x315   :  { %v1537_v56 = vsel %vm1466_vm12, %v2800_v11, 16  ;;  %vm1498_vm14 = vcmp.eq.f32.partialorder %v4131_v35, %v1400_v2  ;;  %v1340_v59 = vrot.slane %v3339_v24, %v4099_v14  ;;  %v1536_v58 = vsel %vm1465_vm15, %v2798_v10, 16  ;;  %v4135_v24 = vld [vmem:[#allocation53_spill] sm:$0xff] }
 0x316   :  { %v1569_v3 = vsel %vm1498_vm14, %v2800_v11, 16  ;;  %vm1497_vm11 = vcmp.eq.f32.partialorder %v4134_v18, %v1400_v2  ;;  %v1404_v0 = vrot.slane %v3348_v39, %v4099_v14 }
 0x317   :  { %vm1468_vm0 = vcmp.eq.f32.partialorder %v4133_v17, %v1340_v59  ;;  %v1568_v7 = vsel %vm1497_vm11, %v2798_v10, 16  ;;  %vm1467_vm13 = vcmp.eq.f32.partialorder %v4136_v27, %v1340_v59 }
 0x318   :  { %1636 = vperm.xlu0 %2634, %v1529_v61   ;;  %1723 = vperm.xlu1 %2635, %v1558_v13   ;;  %v1539_v63 = vsel %vm1468_vm0, %v2800_v11, 16  ;;  %vm1500_vm12 = vcmp.eq.f32.partialorder %v4135_v24, %v1404_v0  ;;  %v1538_v13 = vsel %vm1467_vm13, %v2798_v10, 16  ;;  %vm1499_vm14 = vcmp.eq.f32.partialorder %v4137_v4, %v1404_v0 }
 0x319   :  { %v1571_v61 = vsel %vm1500_vm12, %v2800_v11, 16  ;;  %v1570_v39 = vsel %vm1499_vm14, %v2798_v10, 16 }
 0x31c   :  { %1732 = vperm.xlu0 %2634, %v1561_v48   ;;  %1633 = vperm.xlu1 %2635, %v1528_v30  }
 0x320   :  { %1642 = vperm.xlu0 %2634, %v1531_v47   ;;  %1729 = vperm.xlu1 %2635, %v1560_v49  }
 0x324   :  { %1738 = vperm.xlu0 %2634, %v1563_v12   ;;  %1639 = vperm.xlu1 %2635, %v1530_v1  }
 0x328   :  { %1648 = vperm.xlu0 %2634, %v1533_v32   ;;  %1735 = vperm.xlu1 %2635, %v1562_v22  }
 0x32c   :  { %1744 = vperm.xlu0 %2634, %v1565_v54   ;;  %1645 = vperm.xlu1 %2635, %v1532_v29  }
 0x330   :  { %1654 = vperm.xlu0 %2634, %v1535_v16   ;;  %1741 = vperm.xlu1 %2635, %v1564_v38  }
 0x334   :  { %1750 = vperm.xlu0 %2634, %v1567_v5   ;;  %1651 = vperm.xlu1 %2635, %v1534_v51  }
 0x338   :  { %1660 = vperm.xlu0 %2634, %v1537_v56   ;;  %1747 = vperm.xlu1 %2635, %v1566_v55  }
 0x33c   :  { %1756 = vperm.xlu0 %2634, %v1569_v3   ;;  %1657 = vperm.xlu1 %2635, %v1536_v58  }
 0x340   :  { %1666 = vperm.xlu0 %2634, %v1539_v63   ;;  %1753 = vperm.xlu1 %2635, %v1568_v7  }
 0x344   :  { %1762 = vperm.xlu0 %2634, %v1571_v61   ;;  %1663 = vperm.xlu1 %2635, %v1538_v13  }
 0x347   :  { %v1574_v53 = vpop.permute.xlu1 %1573  ;;  %v1583_v14 = vpop.permute.xlu0 %1582 }
 0x348   :  { %1759 = vperm.xlu1 %2635, %v1570_v39   ;;  %v1780_v33 = vrot.slane %v1583_v14, %v3083_v52  ;;  %v1767_v16 = vrot.slane %v1574_v53, %v3080_v36 }
 0x34b   :  { %v1577_v15 = vpop.permute.xlu1 %1576  ;;  %v1673_v48 = vpop.permute.xlu0 %1672 }
 0x34c   :  { %v1771_v43 = vrot.slane %v1577_v15, %v3083_v52  ;;  %v1915_v23 = vrot.slane %v1673_v48, %v3083_v52 }
 0x34e   :  { %v1772_v51 = vsel %vm940_vm2, %v1771_v43, %v1767_v16 }
 0x34f   :  { %v1580_v30 = vpop.permute.xlu1 %1579  ;;  %v1679_v37 = vpop.permute.xlu0 %1678 }
 0x350   :  { %v1776_v26 = vrot.slane %v1580_v30, %v3080_v36  ;;  %v1924_v2 = vrot.slane %v1679_v37, %v3083_v52 }
 0x352   :  { %v1781_v9 = vsel %vm940_vm2, %v1780_v33, %v1776_v26 }
 0x353   :  { %v1670_v8 = vpop.permute.xlu1 %1669  ;;  %v1589_v21 = vpop.permute.xlu0 %1588  ;;  %v2052_v59 = vsel %vm1221_vm3, %v1781_v9, %v1772_v51 }
 0x354   :  { %v1911_v38 = vrot.slane %v1670_v8, %v3080_v36  ;;  %v1789_v45 = vrot.slane %v1589_v21, %v3083_v52 }
 0x356   :  { %v1916_v3 = vsel %vm940_vm2, %v1915_v23, %v1911_v38 }
 0x357   :  { %v1676_v47 = vpop.permute.xlu1 %1675  ;;  %v1685_v49 = vpop.permute.xlu0 %1684 }
 0x358   :  { %v1920_v50 = vrot.slane %v1676_v47, %v3080_v36  ;;  %v1933_v61 = vrot.slane %v1685_v49, %v3083_v52 }
 0x35a   :  { %v1925_v27 = vsel %vm940_vm2, %v1924_v2, %v1920_v50 }
 0x35b   :  { %v1586_v11 = vpop.permute.xlu1 %1585  ;;  %v1595_v6 = vpop.permute.xlu0 %1594 }
 0x35c   :  { %v1785_v34 = vrot.slane %v1586_v11, %v3080_v36  ;;  %v1798_v55 = vrot.slane %v1595_v6, %v3083_v52 }
 0x35e   :  { %v1790_v56 = vsel %vm940_vm2, %v1789_v45, %v1785_v34 }
 0x35f   :  { %v1682_v41 = vpop.permute.xlu1 %1681  ;;  %v1691_v42 = vpop.permute.xlu0 %1690  ;;  %v2053_v13 = vsel %vm1223_vm4, %v1790_v56, %v2052_v59 }
 0x360   :  { %v1929_v58 = vrot.slane %v1682_v41, %v3080_v36  ;;  %v1942_v53 = vrot.slane %v1691_v42, %v3083_v52 }
 0x362   :  { %v1934_v48 = vsel %vm940_vm2, %v1933_v61, %v1929_v58 }
 0x363   :  { %v1592_v12 = vpop.permute.xlu1 %1591  ;;  %v1601_v1 = vpop.permute.xlu0 %1600 }
 0x364   :  { %v1794_v44 = vrot.slane %v1592_v12, %v3080_v36  ;;  %v1807_v0 = vrot.slane %v1601_v1, %v3083_v52 }
 0x366   :  { %v1799_v18 = vsel %vm940_vm2, %v1798_v55, %v1794_v44 }
 0x367   :  { %v1688_v40 = vpop.permute.xlu1 %1687  ;;  %v1697_v46 = vpop.permute.xlu0 %1696  ;;  %v2054_v30 = vsel %vm1225_vm5, %v1799_v18, %v2053_v13 }
 0x368   :  { %v1938_v63 = vrot.slane %v1688_v40, %v3080_v36  ;;  %v1951_v47 = vrot.slane %v1697_v46, %v3083_v52 }
 0x36a   :  { %v1943_v21 = vsel %vm940_vm2, %v1942_v53, %v1938_v63 }
 0x36b   :  { %v1598_v62 = vpop.permute.xlu1 %1597  ;;  %v1607_v32 = vpop.permute.xlu0 %1606 }
 0x36c   :  { %v1803_v35 = vrot.slane %v1598_v62, %v3080_v36  ;;  %v1816_v4 = vrot.slane %v1607_v32, %v3083_v52  ;;  %v2066_v62 = vsel %vm1221_vm3, %v1925_v27, %v1916_v3 }
 0x36e   :  { %v1808_v14 = vsel %vm940_vm2, %v1807_v0, %v1803_v35 }
 0x36f   :  { %v1694_v10 = vpop.permute.xlu1 %1693  ;;  %v1703_v22 = vpop.permute.xlu0 %1702  ;;  %v2055_v42 = vsel %vm1227_vm6, %v1808_v14, %v2054_v30 }
 0x370   :  { %v1947_v39 = vrot.slane %v1694_v10, %v3080_v36  ;;  %v1960_v12 = vrot.slane %v1703_v22, %v3083_v52 }
 0x372   :  { %v1952_v32 = vsel %vm940_vm2, %v1951_v47, %v1947_v39 }
 0x373   :  { %v1604_v25 = vpop.permute.xlu1 %1603  ;;  %v1613_v28 = vpop.permute.xlu0 %1612 }
 0x374   :  { %v1812_v17 = vrot.slane %v1604_v25, %v3080_v36  ;;  %v1825_v15 = vrot.slane %v1613_v28, %v3083_v52  ;;  %v2067_v25 = vsel %vm1223_vm4, %v1934_v48, %v2066_v62 }
 0x376   :  { %v1817_v37 = vsel %vm940_vm2, %v1816_v4, %v1812_v17 }
 0x377   :  { %v1700_v54 = vpop.permute.xlu1 %1699  ;;  %v1709_v29 = vpop.permute.xlu0 %1708  ;;  %v2056_v46 = vsel %vm1229_vm7, %v1817_v37, %v2055_v42 }
 0x378   :  { %v1956_v8 = vrot.slane %v1700_v54, %v3080_v36  ;;  %v1969_v10 = vrot.slane %v1709_v29, %v3083_v52  ;;  %v2068_v54 = vsel %vm1225_vm5, %v1943_v21, %v2067_v25 }
 0x379   :  { %v2069_v38 = vsel %vm1227_vm6, %v1952_v32, %v2068_v54 }
 0x37a   :  { %v1961_v28 = vsel %vm940_vm2, %v1960_v12, %v1956_v8 }
 0x37b   :  { %v1610_v5 = vpop.permute.xlu1 %1609  ;;  %v1619_v60 = vpop.permute.xlu0 %1618  ;;  %v2070_v44 = vsel %vm1229_vm7, %v1961_v28, %v2069_v38 }
 0x37c   :  { %v1821_v7 = vrot.slane %v1610_v5, %v3080_v36  ;;  %v1834_v1 = vrot.slane %v1619_v60, %v3083_v52 }
 0x37e   :  { %v1826_v49 = vsel %vm940_vm2, %v1825_v15, %v1821_v7 }
 0x37f   :  { %v1706_v24 = vpop.permute.xlu1 %1705  ;;  %v1715_v6 = vpop.permute.xlu0 %1714  ;;  %v2057_v26 = vsel %vm1231_vm8, %v1826_v49, %v2056_v46 }
 0x380   :  { %v1965_v11 = vrot.slane %v1706_v24, %v3080_v36  ;;  %v1978_v29 = vrot.slane %v1715_v6, %v3083_v52 }
 0x382   :  { %v1970_v43 = vsel %vm940_vm2, %v1969_v10, %v1965_v11 }
 0x383   :  { %v1616_v41 = vpop.permute.xlu1 %1615  ;;  %v2071_v51 = vsel %vm1231_vm8, %v1970_v43, %v2070_v44 }
 0x384   :  { %v1830_v40 = vrot.slane %v1616_v41, %v3080_v36 }
 0x386   :  { %v1835_v22 = vsel %vm940_vm2, %v1834_v1, %v1830_v40 }
 0x387   :  { %v1712_v33 = vpop.permute.xlu1 %1711  ;;  %v1625_v34 = vpop.permute.xlu0 %1624  ;;  %v2058_v16 = vsel %vm1233_vm9, %v1835_v22, %v2057_v26 }
 0x388   :  { %v1974_v9 = vrot.slane %v1712_v33, %v3080_v36  ;;  %v3501_v45 = vsel %vm1260_vm10, %v2058_v16, 2147483647  ;;  %v1843_v42 = vrot.slane %v1625_v34, %v3083_v52 }
 0x389   :  { %v2082_v5 = vshra.s32 %v3501_v45, 16 }
 0x38a   :  { %v1979_v23 = vsel %vm940_vm2, %v1978_v29, %v1974_v9 }
 0x38b   :  { %v1622_v50 = vpop.permute.xlu1 %1621  ;;  %v1631_v2 = vpop.permute.xlu0 %1630  ;;  %v3507_v56 = vcvt.s32.f32 %v2082_v5  ;;  %v2072_v55 = vsel %vm1233_vm9, %v1979_v23, %v2071_v51 }
 0x38c   :  { %v3511_v35 = vsel %vm1260_vm10, %v2072_v55, 2147483647  ;;  %v1839_v11 = vrot.slane %v1622_v50, %v3080_v36  ;;  %v1852_v6 = vrot.slane %v1631_v2, %v3083_v52 }
 0x38d   :  { %2085 = vmin.xlane.f32.xlu1 %v3507_v56  ;;  %v2112_v60 = vshra.s32 %v3511_v35, 16 }
 0x38e   :  { %v1844_v10 = vsel %vm940_vm2, %v1843_v42, %v1839_v11 }
 0x38f   :  { %v1628_v59 = vpop.permute.xlu1 %1627  ;;  %v1721_v3 = vpop.permute.xlu0 %1720  ;;  %v3515_v58 = vcvt.s32.f32 %v2112_v60 }
 0x390   :  { %v1848_v21 = vrot.slane %v1628_v59, %v3080_v36  ;;  %v1987_v25 = vrot.slane %v1721_v3, %v3083_v52 }
 0x391   :  { %2115 = vmin.xlane.f32.xlu0 %v3515_v58 }
 0x392   :  { %v1853_v12 = vsel %vm940_vm2, %v1852_v6, %v1848_v21 }
 0x393   :  { %v1718_v17 = vpop.permute.xlu1 %1717  ;;  %v1727_v18 = vpop.permute.xlu0 %1726  ;;  %v2059_v26 = vsel %vm1221_vm3, %v1853_v12, %v1844_v10 }
 0x394   :  { %v1983_v1 = vrot.slane %v1718_v17, %v3080_v36  ;;  %v1996_v34 = vrot.slane %v1727_v18, %v3083_v52 }
 0x396   :  { %v1988_v33 = vsel %vm940_vm2, %v1987_v25, %v1983_v1 }
 0x397   :  { %v1724_v0 = vpop.permute.xlu1 %1723  ;;  %v1637_v63 = vpop.permute.xlu0 %1636 }
 0x398   :  { %v1861_v40 = vrot.slane %v1637_v63, %v3083_v52  ;;  %v1992_v28 = vrot.slane %v1724_v0, %v3080_v36 }
 0x39a   :  { %v1997_v50 = vsel %vm940_vm2, %v1996_v34, %v1992_v28 }
 0x39b   :  { %v1634_v7 = vpop.permute.xlu1 %1633  ;;  %v1733_v24 = vpop.permute.xlu0 %1732 }
 0x39c   :  { %v1857_v41 = vrot.slane %v1634_v7, %v3080_v36  ;;  %v2005_v55 = vrot.slane %v1733_v24, %v3083_v52 }
 0x39e   :  { %v1862_v22 = vsel %vm940_vm2, %v1861_v40, %v1857_v41 }
 0x39f   :  { %v1730_v27 = vpop.permute.xlu1 %1729  ;;  %v1643_v61 = vpop.permute.xlu0 %1642  ;;  %v2060_v2 = vsel %vm1223_vm4, %v1862_v22, %v2059_v26 }
 0x3a0   :  { %v1870_v54 = vrot.slane %v1643_v61, %v3083_v52  ;;  %v2001_v16 = vrot.slane %v1730_v27, %v3080_v36 }
 0x3a2   :  { %v2006_v0 = vsel %vm940_vm2, %v2005_v55, %v2001_v16 }
 0x3a3   :  { %v1640_v13 = vpop.permute.xlu1 %1639  ;;  %v1739_v4 = vpop.permute.xlu0 %1738 }
 0x3a4   :  { %v1866_v62 = vrot.slane %v1640_v13, %v3080_v36  ;;  %v2014_v59 = vrot.slane %v1739_v4, %v3083_v52 }
 0x3a6   :  { %v1871_v29 = vsel %vm940_vm2, %v1870_v54, %v1866_v62 }
 0x3a7   :  { %v1736_v53 = vpop.permute.xlu1 %1735  ;;  %v1649_v14 = vpop.permute.xlu0 %1648  ;;  %v2061_v63 = vsel %vm1225_vm5, %v1871_v29, %v2060_v2 }
 0x3a8   :  { %v2010_v9 = vrot.slane %v1736_v53, %v3080_v36  ;;  %v1879_v44 = vrot.slane %v1649_v14, %v3083_v52 }
 0x3aa   :  { %v2015_v24 = vsel %vm940_vm2, %v2014_v59, %v2010_v9 }
 0x3ab   :  { %v1646_v39 = vpop.permute.xlu1 %1645  ;;  %v1745_v15 = vpop.permute.xlu0 %1744 }
 0x3ac   :  { %v1875_v43 = vrot.slane %v1646_v39, %v3080_v36  ;;  %v2023_v61 = vrot.slane %v1745_v15, %v3083_v52 }
 0x3ae   :  { %v1880_v3 = vsel %vm940_vm2, %v1879_v44, %v1875_v43  ;;  %v2111_v44 = vand.u32 65535, %v3511_v35 }
 0x3af   :  { %v1742_v48 = vpop.permute.xlu1 %1741  ;;  %v1655_v30 = vpop.permute.xlu0 %1654  ;;  %v2062_v14 = vsel %vm1227_vm6, %v1880_v3, %v2061_v63 }
 0x3b0   :  { %v1888_v60 = vrot.slane %v1655_v30, %v3083_v52  ;;  %v2019_v17 = vrot.slane %v1742_v48, %v3080_v36 }
 0x3b2   :  { %v2024_v21 = vsel %vm940_vm2, %v2023_v61, %v2019_v17  ;;  %v4138_v61 = vld [vmem:[#allocation6_spill] sm:$0xff] }
 0x3b3   :  { %v1652_v37 = vpop.permute.xlu1 %1651  ;;  %v1751_v8 = vpop.permute.xlu0 %1750 }
 0x3b4   :  { %v1884_v38 = vrot.slane %v1652_v37, %v3080_v36  ;;  %v2032_v39 = vrot.slane %v1751_v8, %v3083_v52  ;;  %v2073_v37 = vsel %vm1221_vm3, %v1997_v50, %v1988_v33 }
 0x3b5   :  { %v2074_v11 = vsel %vm1223_vm4, %v2006_v0, %v2073_v37 }
 0x3b6   :  { %v1889_v7 = vsel %vm940_vm2, %v1888_v60, %v1884_v38  ;;  %v2075_v42 = vsel %vm1225_vm5, %v2015_v24, %v2074_v11  ;;  %v2081_v38 = vand.u32 65535, %v3501_v45 }
 0x3b7   :  { %v1748_v47 = vpop.permute.xlu1 %1747  ;;  %v1661_v49 = vpop.permute.xlu0 %1660  ;;  %v2076_v62 = vsel %vm1227_vm6, %v2024_v21, %v2075_v42 }
 0x3b8   :  { %v1897_v18 = vrot.slane %v1661_v49, %v3083_v52  ;;  %v2028_v27 = vrot.slane %v1748_v47, %v3080_v36  ;;  %v2063_v47 = vsel %vm1229_vm7, %v1889_v7, %v2062_v14  ;;  %v2083_v9 = vcvt.s32.f32 %v2081_v38 }
 0x3ba   :  { %v2033_v6 = vsel %vm940_vm2, %v2032_v39, %v2028_v27 }
 0x3bb   :  { %v1658_v32 = vpop.permute.xlu1 %1657  ;;  %v1757_v46 = vpop.permute.xlu0 %1756  ;;  %v2077_v25 = vsel %vm1229_vm7, %v2033_v6, %v2076_v62 }
 0x3bc   :  { %v1893_v5 = vrot.slane %v1658_v32, %v3080_v36  ;;  %v2041_v15 = vrot.slane %v1757_v46, %v3083_v52 }
 0x3be   :  { %v1898_v13 = vsel %vm940_vm2, %v1897_v18, %v1893_v5 }
 0x3bf   :  { %v1754_v51 = vpop.permute.xlu1 %1753  ;;  %v1667_v23 = vpop.permute.xlu0 %1666  ;;  %v2064_v41 = vsel %vm1231_vm8, %v1898_v13, %v2063_v47 }
 0x3c0   :  { %v2037_v4 = vrot.slane %v1754_v51, %v3080_v36  ;;  %v1906_v48 = vrot.slane %v1667_v23, %v3083_v52  ;;  %v2113_v23 = vcvt.s32.f32 %v2111_v44 }
 0x3c2   :  { %v2042_v12 = vsel %vm940_vm2, %v2041_v15, %v2037_v4  ;;  %v4139_v4 = vld [vmem:[#allocation56_spill] sm:$0xff] }
 0x3c3   :  { %v1664_v53 = vpop.permute.xlu1 %1663  ;;  %v1763_v49 = vpop.permute.xlu0 %1762  ;;  %v2078_v26 = vsel %vm1231_vm8, %v2042_v12, %v2077_v25 }
 0x3c4   :  { %v1902_v30 = vrot.slane %v1664_v53, %v3080_v36  ;;  %v2050_v32 = vrot.slane %v1763_v49, %v3083_v52 }
 0x3c6   :  { %v1907_v8 = vsel %vm940_vm2, %v1906_v48, %v1902_v30  ;;  %v4140_v48 = vld [vmem:[#allocation57_spill] sm:$0xff] }
 0x3c7   :  { %v1760_v1 = vpop.permute.xlu1 %1759  ;;  %v2065_v40 = vsel %vm1233_vm9, %v1907_v8, %v2064_v41 }
 0x3c8   :  { %v2046_v46 = vrot.slane %v1760_v1, %v3080_v36  ;;  %v2095_v10 = vsel %vm1260_vm10, %v2065_v40, 2147483647 }
 0x3c9   :  { %v2097_v28 = vshra.s32 %v2095_v10, 16  ;;  %v2096_v2 = vand.u32 65535, %v2095_v10 }
 0x3ca   :  { %v2051_v22 = vsel %vm940_vm2, %v2050_v32, %v2046_v46 }
 0x3cb   :  { %v2099_v54 = vcvt.s32.f32 %v2097_v28  ;;  %v2079_v43 = vsel %vm1233_vm9, %v2051_v22, %v2078_v26  ;;  %v2098_v60 = vcvt.s32.f32 %v2096_v2 }
 0x3cc   :  { %v2125_v33 = vsel %vm1260_vm10, %v2079_v43, 2147483647 }
 0x3cd   :  { %2100 = vmin.xlane.f32.xlu0 %v2099_v54  ;;  %v2127_v34 = vshra.s32 %v2125_v33, 16  ;;  %v2126_v59 = vand.u32 65535, %v2125_v33 }
 0x3cf   :  { %v2129_v16 = vcvt.s32.f32 %v2127_v34  ;;  %v2128_v17 = vcvt.s32.f32 %v2126_v59 }
 0x3d1   :  { %2130 = vmin.xlane.f32.xlu0 %v2129_v16 }
 0x41a   :  { %v2086_v29 = vpop.xlane.xlu1 %2085 }
 0x41b   :  { %vm2087_vm3 = vcmp.eq.f32.partialorder %v3507_v56, %v2086_v29  ;;  %v2092_v56 = vcvt.f32.s32 %v2086_v29 }
 0x41c   :  { %v2088_v5 = vsel %vm2087_vm3, %v2083_v9, inf }
 0x41d   :  { %2089 = vmin.xlane.f32.xlu1 %v2088_v5  ;;  %v2093_v0 = vshll.u32 %v2092_v56, 16 }
 0x41e   :  { %v2116_v51 = vpop.xlane.xlu0 %2115 }
 0x41f   :  { %vm2117_vm4 = vcmp.eq.f32.partialorder %v3515_v58, %v2116_v51  ;;  %v2122_v63 = vcvt.f32.s32 %v2116_v51 }
 0x420   :  { %v2118_v50 = vsel %vm2117_vm4, %v2113_v23, inf }
 0x421   :  { %2119 = vmin.xlane.f32.xlu1 %v2118_v50  ;;  %v2123_v24 = vshll.u32 %v2122_v63, 16 }
 0x45a   :  { %v2101_v55 = vpop.xlane.xlu0 %2100 }
 0x45b   :  { %vm2102_vm5 = vcmp.eq.f32.partialorder %v2099_v54, %v2101_v55  ;;  %v2107_v21 = vcvt.f32.s32 %v2101_v55 }
 0x45c   :  { %v2103_v45 = vsel %vm2102_vm5, %v2098_v60, inf }
 0x45d   :  { %2104 = vmin.xlane.f32.xlu0 %v2103_v45  ;;  %v2108_v15 = vshll.u32 %v2107_v21, 16 }
 0x45e   :  { %v2131_v3 = vpop.xlane.xlu0 %2130 }
 0x45f   :  { %vm2132_vm6 = vcmp.eq.f32.partialorder %v2129_v16, %v2131_v3  ;;  %v2137_v49 = vcvt.f32.s32 %v2131_v3 }
 0x460   :  { %v2133_v35 = vsel %vm2132_vm6, %v2128_v17, inf }
 0x461   :  { %2134 = vmin.xlane.f32.xlu0 %v2133_v35  ;;  %v2138_v8 = vshll.u32 %v2137_v49, 16 }
 0x4aa   :  { %v2090_v18 = vpop.xlane.xlu1 %2089 }
 0x4ab   :  { %v2091_v7 = vcvt.f32.s32 %v2090_v18 }
 0x4ad   :  { %v3586_v58 = vadd.s32 %v2093_v0, %v2091_v7 }
 0x4ae   :  { %v2120_v27 = vpop.xlane.xlu1 %2119 }
 0x4af   :  { %vm2140_vm7 = vcmp.eq.s32.totalorder %v4138_v61, %v3586_v58  ;;  %v2121_v13 = vcvt.f32.s32 %v2120_v27 }
 0x4b0   :  { %v3594_v53 = vsel %vm2140_vm7, inf, %v4139_v4 }
 0x4b1   :  { %v3596_v14 = vadd.s32 %v2123_v24, %v2121_v13  ;;  %v2200_v39 = vsel %vm1260_vm10, %v3594_v53, inf }
 0x4b2   :  { %2201 = vmin.xlane.f32.xlu1 %v2200_v39 }
 0x4b3   :  { %vm2142_vm8 = vcmp.eq.s32.totalorder %v4138_v61, %v3596_v14 }
 0x4b4   :  { %v3606_v30 = vsel %vm2142_vm8, inf, %v4140_v48 }
 0x4b5   :  { %v2206_v37 = vsel %vm1260_vm10, %v3606_v30, inf }
 0x4b6   :  { %2207 = vmin.xlane.f32.xlu1 %v2206_v37 }
 0x4ea   :  { %v2105_v47 = vpop.xlane.xlu0 %2104 }
 0x4eb   :  { %v2106_v11 = vcvt.f32.s32 %v2105_v47 }
 0x4ed   :  { %v3610_v6 = vadd.s32 %v2108_v15, %v2106_v11 }
 0x4ee   :  { %v2135_v41 = vpop.xlane.xlu0 %2134 }
 0x4ef   :  { %vm2141_vm9 = vcmp.eq.s32.totalorder %v4138_v61, %v3610_v6  ;;  %v2136_v42 = vcvt.f32.s32 %v2135_v41 }
 0x4f0   :  { %v3618_v12 = vsel %vm2141_vm9, inf, %v3227_v19 }
 0x4f1   :  { %v3620_v1 = vadd.s32 %v2138_v8, %v2136_v42  ;;  %v2203_v40 = vsel %vm1260_vm10, %v3618_v12, inf }
 0x4f2   :  { %2204 = vmin.xlane.f32.xlu0 %v2203_v40 }
 0x4f3   :  { %vm2143_vm15 = vcmp.eq.s32.totalorder %v4138_v61, %v3620_v1 }
 0x4f4   :  { %v3630_v62 = vsel %vm2143_vm15, inf, %v3238_v57 }
 0x4f5   :  { %v2209_v32 = vsel %vm1260_vm10, %v3630_v62, inf }
 0x4f6   :  { %2210 = vmin.xlane.f32.xlu0 %v2209_v32 }
 0x53f   :  { %v2202_v19 = vpop.xlane.xlu1 %2201 }
 0x540   :  { %vm2212_vm0 = vcmp.eq.f32.partialorder %v3594_v53, %v2202_v19 }
 0x541   :  { %v2216_v46 = vsel %vm2212_vm0, %v4138_v61, 16 }
 0x542   :  { %v2220_v10 = vsel %vm1260_vm10, %v2216_v46, 2147483647 }
 0x543   :  { %v2222_v25 = vshra.s32 %v2220_v10, 16  ;;  %v2208_v28 = vpop.xlane.xlu1 %2207  ;;  %v2221_v50 = vand.u32 65535, %v2220_v10 }
 0x544   :  { %vm2214_vm11 = vcmp.eq.f32.partialorder %v3606_v30, %v2208_v28 }
 0x545   :  { %v2218_v26 = vsel %vm2214_vm11, %v4138_v61, 16  ;;  %v2224_v22 = vcvt.s32.f32 %v2222_v25  ;;  %v2223_v60 = vcvt.s32.f32 %v2221_v50 }
 0x546   :  { %v2250_v57 = vsel %vm1260_vm10, %v2218_v26, 2147483647 }
 0x547   :  { %v2252_v54 = vshra.s32 %v2250_v57, 16  ;;  %2225 = vmin.xlane.f32.xlu1 %v2224_v22  ;;  %v2251_v2 = vand.u32 65535, %v2250_v57 }
 0x549   :  { %v2254_v43 = vcvt.s32.f32 %v2252_v54  ;;  %v2253_v3 = vcvt.s32.f32 %v2251_v2 }
 0x54b   :  { %2255 = vmin.xlane.f32.xlu1 %v2254_v43 }
 0x57f   :  { %v2205_v33 = vpop.xlane.xlu0 %2204 }
 0x580   :  { %vm2213_vm12 = vcmp.eq.f32.partialorder %v3618_v12, %v2205_v33 }
 0x581   :  { %v2217_v34 = vsel %vm2213_vm12, %v4138_v61, 16 }
 0x582   :  { %v2235_v16 = vsel %vm1260_vm10, %v2217_v34, 2147483647 }
 0x583   :  { %v2237_v38 = vshra.s32 %v2235_v16, 16  ;;  %v2211_v29 = vpop.xlane.xlu0 %2210  ;;  %v2236_v35 = vand.u32 65535, %v2235_v16 }
 0x584   :  { %vm2215_vm13 = vcmp.eq.f32.partialorder %v3630_v62, %v2211_v29 }
 0x585   :  { %v2219_v9 = vsel %vm2215_vm13, %v4138_v61, 16  ;;  %v2239_v44 = vcvt.s32.f32 %v2237_v38  ;;  %v2238_v0 = vcvt.s32.f32 %v2236_v35 }
 0x586   :  { %v2265_v5 = vsel %vm1260_vm10, %v2219_v9, 2147483647 }
 0x587   :  { %v2267_v51 = vshra.s32 %v2265_v5, 16  ;;  %2240 = vmin.xlane.f32.xlu0 %v2239_v44  ;;  %v2266_v56 = vand.u32 65535, %v2265_v5 }
 0x589   :  { %v2269_v23 = vcvt.s32.f32 %v2267_v51  ;;  %v2268_v27 = vcvt.s32.f32 %v2266_v56 }
 0x58b   :  { %2270 = vmin.xlane.f32.xlu0 %v2269_v23 }
 0x5d4   :  { %v2226_v55 = vpop.xlane.xlu1 %2225 }
 0x5d5   :  { %vm2227_vm14 = vcmp.eq.f32.partialorder %v2224_v22, %v2226_v55  ;;  %v2232_v13 = vcvt.f32.s32 %v2226_v55 }
 0x5d6   :  { %v2228_v59 = vsel %vm2227_vm14, %v2223_v60, inf }
 0x5d7   :  { %2229 = vmin.xlane.f32.xlu1 %v2228_v59  ;;  %v2233_v39 = vshll.u32 %v2232_v13, 16 }
 0x5d8   :  { %v2256_v45 = vpop.xlane.xlu1 %2255 }
 0x5d9   :  { %vm2257_vm3 = vcmp.eq.f32.partialorder %v2254_v43, %v2256_v45  ;;  %v2262_v48 = vcvt.f32.s32 %v2256_v45 }
 0x5da   :  { %v2258_v17 = vsel %vm2257_vm3, %v2253_v3, inf }
 0x5db   :  { %2259 = vmin.xlane.f32.xlu1 %v2258_v17  ;;  %v2263_v15 = vshll.u32 %v2262_v48, 16 }
 0x614   :  { %v2241_v18 = vpop.xlane.xlu0 %2240 }
 0x615   :  { %vm2242_vm4 = vcmp.eq.f32.partialorder %v2239_v44, %v2241_v18 }
 0x616   :  { %v2243_v63 = vsel %vm2242_vm4, %v2238_v0, inf }
 0x617   :  { %2244 = vmin.xlane.f32.xlu0 %v2243_v63 }
 0x618   :  { %v2271_v7 = vpop.xlane.xlu0 %2270 }
 0x619   :  { %vm2272_vm5 = vcmp.eq.f32.partialorder %v2269_v23, %v2271_v7  ;;  %v2277_v46 = vcvt.f32.s32 %v2271_v7 }
 0x61a   :  { %v2273_v24 = vsel %vm2272_vm5, %v2268_v27, inf }
 0x61b   :  { %2274 = vmin.xlane.f32.xlu0 %v2273_v24  ;;  %v2278_v26 = vshll.u32 %v2277_v46, 16 }
 0x664   :  { %v2230_v4 = vpop.xlane.xlu1 %2229 }
 0x665   :  { %v2231_v37 = vcvt.f32.s32 %v2230_v4 }
 0x667   :  { %v3646_v21 = vadd.s32 %v2233_v39, %v2231_v37 }
 0x668   :  { %v2260_v47 = vpop.xlane.xlu1 %2259 }
 0x669   :  { %vm2280_vm6 = vcmp.eq.s32.totalorder %v4138_v61, %v3646_v21  ;;  %v2261_v49 = vcvt.f32.s32 %v2260_v47 }
 0x66a   :  { %v3654_v11 = vsel %vm2280_vm6, inf, %v3594_v53  ;;  %v2247_v53 = vcvt.f32.s32 %v2241_v18 }
 0x66b   :  { %v3656_v41 = vadd.s32 %v2263_v15, %v2261_v49  ;;  %v2304_v8 = vsel %vm1260_vm10, %v3654_v11, inf }
 0x66c   :  { %2305 = vmin.xlane.f32.xlu1 %v2304_v8  ;;  %v2248_v19 = vshll.u32 %v2247_v53, 16 }
 0x66d   :  { %vm2282_vm0 = vcmp.eq.s32.totalorder %v4138_v61, %v3656_v41 }
 0x66e   :  { %v3666_v42 = vsel %vm2282_vm0, inf, %v3606_v30 }
 0x66f   :  { %v2310_v40 = vsel %vm1260_vm10, %v3666_v42, inf }
 0x670   :  { %2311 = vmin.xlane.f32.xlu1 %v2310_v40 }
 0x6a4   :  { %v2245_v32 = vpop.xlane.xlu0 %2244 }
 0x6a5   :  { %v2246_v10 = vcvt.f32.s32 %v2245_v32 }
 0x6a7   :  { %v3670_v25 = vadd.s32 %v2248_v19, %v2246_v10 }
 0x6a8   :  { %v2275_v28 = vpop.xlane.xlu0 %2274 }
 0x6a9   :  { %vm2281_vm11 = vcmp.eq.s32.totalorder %v4138_v61, %v3670_v25  ;;  %v2276_v22 = vcvt.f32.s32 %v2275_v28 }
 0x6aa   :  { %v3678_v30 = vsel %vm2281_vm11, inf, %v3618_v12 }
 0x6ab   :  { %v3680_v57 = vadd.s32 %v2278_v26, %v2276_v22  ;;  %v2307_v54 = vsel %vm1260_vm10, %v3678_v30, inf }
 0x6ac   :  { %2308 = vmin.xlane.f32.xlu0 %v2307_v54 }
 0x6ad   :  { %vm2283_vm12 = vcmp.eq.s32.totalorder %v4138_v61, %v3680_v57 }
 0x6ae   :  { %v3690_v43 = vsel %vm2283_vm12, inf, %v3630_v62 }
 0x6af   :  { %v2313_v33 = vsel %vm1260_vm10, %v3690_v43, inf }
 0x6b0   :  { %2314 = vmin.xlane.f32.xlu0 %v2313_v33 }
 0x6f9   :  { %v2306_v12 = vpop.xlane.xlu1 %2305 }
 0x6fa   :  { %vm2316_vm13 = vcmp.eq.f32.partialorder %v3654_v11, %v2306_v12 }
 0x6fb   :  { %v2320_v34 = vsel %vm2316_vm13, %v4138_v61, 16 }
 0x6fc   :  { %v2324_v16 = vsel %vm1260_vm10, %v2320_v34, 2147483647 }
 0x6fd   :  { %v2326_v38 = vshra.s32 %v2324_v16, 16  ;;  %v2312_v29 = vpop.xlane.xlu1 %2311  ;;  %v2325_v56 = vand.u32 65535, %v2324_v16 }
 0x6fe   :  { %vm2318_vm14 = vcmp.eq.f32.partialorder %v3666_v42, %v2312_v29 }
 0x6ff   :  { %v2322_v9 = vsel %vm2318_vm14, %v4138_v61, 16  ;;  %v2328_v44 = vcvt.s32.f32 %v2326_v38  ;;  %v2327_v63 = vcvt.s32.f32 %v2325_v56 }
 0x700   :  { %v2354_v62 = vsel %vm1260_vm10, %v2322_v9, 2147483647 }
 0x701   :  { %v2356_v5 = vshra.s32 %v2354_v62, 16  ;;  %2329 = vmin.xlane.f32.xlu1 %v2328_v44  ;;  %v2355_v18 = vand.u32 65535, %v2354_v62 }
 0x703   :  { %v2358_v51 = vcvt.s32.f32 %v2356_v5  ;;  %v2357_v24 = vcvt.s32.f32 %v2355_v18 }
 0x705   :  { %2359 = vmin.xlane.f32.xlu1 %v2358_v51 }
 0x739   :  { %v2309_v23 = vpop.xlane.xlu0 %2308 }
 0x73a   :  { %vm2317_vm3 = vcmp.eq.f32.partialorder %v3678_v30, %v2309_v23 }
 0x73b   :  { %v2321_v50 = vsel %vm2317_vm3, %v4138_v61, 16 }
 0x73c   :  { %v2339_v2 = vsel %vm1260_vm10, %v2321_v50, 2147483647 }
 0x73d   :  { %v2341_v55 = vshra.s32 %v2339_v2, 16  ;;  %v2315_v60 = vpop.xlane.xlu0 %2314  ;;  %v2340_v4 = vand.u32 65535, %v2339_v2 }
 0x73e   :  { %vm2319_vm4 = vcmp.eq.f32.partialorder %v3690_v43, %v2315_v60 }
 0x73f   :  { %v2323_v59 = vsel %vm2319_vm4, %v4138_v61, 16  ;;  %v2343_v45 = vcvt.s32.f32 %v2341_v55  ;;  %v2342_v37 = vcvt.s32.f32 %v2340_v4  ;;  %vm4036_vm4 = vcmask 7168  }
 0x740   :  { %v2369_v3 = vsel %vm1260_vm10, %v2323_v59, 2147483647  ;;  %v2509_v28 = vsel %vm4036_vm4, %v3586_v58, %v3646_v21  ;;  %v2511_v38 = vsel %vm4036_vm4, %v3596_v14, %v3656_v41  ;;  %v2510_v2 = vsel %vm4036_vm4, %v3610_v6, %v3670_v25 }
 0x741   :  { %v2371_v17 = vshra.s32 %v2369_v3, 16  ;;  %2344 = vmin.xlane.f32.xlu0 %v2343_v45  ;;  %v2370_v39 = vand.u32 65535, %v2369_v3 }
 0x743   :  { %v2373_v35 = vcvt.s32.f32 %v2371_v17  ;;  %v2372_v49 = vcvt.s32.f32 %v2370_v39 }
 0x745   :  { %2374 = vmin.xlane.f32.xlu0 %v2373_v35 }
 0x78e   :  { %v2330_v0 = vpop.xlane.xlu1 %2329 }
 0x78f   :  { %vm2331_vm5 = vcmp.eq.f32.partialorder %v2328_v44, %v2330_v0  ;;  %v2336_v40 = vcvt.f32.s32 %v2330_v0 }
 0x790   :  { %v2332_v7 = vsel %vm2331_vm5, %v2327_v63, inf  ;;  %vm4035_vm5 = vcmask 15360  }
 0x791   :  { %2333 = vmin.xlane.f32.xlu1 %v2332_v7  ;;  %v2337_v32 = vshll.u32 %v2336_v40, 16  ;;  %v3774_v7 = vld [vmem:[%s3973_s1] sm:$0x3]  ;;  %v3785_v40 = vld [vmem:[#allocation3 + $0x10] sm:$0xff] }
 0x792   :  { %v2360_v27 = vpop.xlane.xlu1 %2359  ;;  %v655_v41 = vrot.slane %v3774_v7, %v2742_v31 }
 0x793   :  { %vm2361_vm13 = vcmp.eq.f32.partialorder %v2358_v51, %v2360_v27  ;;  %v2366_v19 = vcvt.f32.s32 %v2360_v27 }
 0x794   :  { %v2362_v13 = vsel %vm2361_vm13, %v2357_v24, inf }
 0x795   :  { %2363 = vmin.xlane.f32.xlu1 %v2362_v13  ;;  %v2367_v22 = vshll.u32 %v2366_v19, 16 }
 0x7ce   :  { %v2345_v48 = vpop.xlane.xlu0 %2344 }
 0x7cf   :  { %vm2346_vm14 = vcmp.eq.f32.partialorder %v2343_v45, %v2345_v48  ;;  %v2351_v44 = vcvt.f32.s32 %v2345_v48 }
 0x7d0   :  { %v2347_v47 = vsel %vm2346_vm14, %v2342_v37, inf }
 0x7d1   :  { %2348 = vmin.xlane.f32.xlu0 %v2347_v47  ;;  %v2352_v5 = vshll.u32 %v2351_v44, 16  ;;  %v3781_v47 = vld [vmem:[#allocation3] sm:$0xff] }
 0x7d2   :  { %v2375_v15 = vpop.xlane.xlu0 %2374 }
 0x7d3   :  { %vm2376_vm3 = vcmp.eq.f32.partialorder %v2373_v35, %v2375_v15  ;;  %v2381_v51 = vcvt.f32.s32 %v2375_v15  ;;  %v2512_v35 = vsel %vm4036_vm4, %v3620_v1, %v3680_v57 }
 0x7d4   :  { %v2377_v8 = vsel %vm2376_vm3, %v2372_v49, inf }
 0x7d5   :  { %2378 = vmin.xlane.f32.xlu0 %v2377_v8  ;;  %v2382_v60 = vshll.u32 %v2381_v51, 16 }
 0x81e   :  { %v2334_v53 = vpop.xlane.xlu1 %2333 }
 0x81f   :  { %v2335_v46 = vcvt.f32.s32 %v2334_v53 }
 0x821   :  { %v3706_v10 = vadd.s32 %v2337_v32, %v2335_v46 }
 0x822   :  { %v2364_v26 = vpop.xlane.xlu1 %2363 }
 0x823   :  { %v3713_v54 = vsel %vm4035_vm5, %v2509_v28, %v3706_v10  ;;  %v2365_v33 = vcvt.f32.s32 %v2364_v26  ;;  %vm4034_vm13 = vcmp.eq.s32.totalorder %v4138_v61, %v3706_v10 }
 0x824   :  { %v2404_v12 = vsel %vm4034_vm13, inf, %v3654_v11 }
 0x825   :  { %v3721_v34 = vadd.s32 %v2367_v22, %v2365_v33  ;;  %v2408_v16 = vsel %vm1260_vm10, %v2404_v12, inf }
 0x826   :  { %2409 = vmin.xlane.f32.xlu1 %v2408_v16 }
 0x827   :  { %v3729_v29 = vsel %vm4035_vm5, %v2511_v38, %v3721_v34  ;;  %vm4033_vm14 = vcmp.eq.s32.totalorder %v4138_v61, %v3721_v34  ;;  %v3793_v38 = vld [vmem:[#allocation3 + $0x8] sm:$0xff] }
 0x828   :  { %v2406_v11 = vsel %vm4033_vm14, inf, %v3666_v42  ;;  %v657_v31 = vmul.f32 %v3793_v38, %v655_v41 }
 0x829   :  { %v2414_v9 = vsel %vm1260_vm10, %v2406_v11, inf }
 0x82a   :  { %2415 = vmin.xlane.f32.xlu1 %v2414_v9 }
 0x85e   :  { %v2349_v62 = vpop.xlane.xlu0 %2348 }
 0x85f   :  { %v2350_v23 = vcvt.f32.s32 %v2349_v62  ;;  %v3797_v62 = vld [vmem:[#allocation3 + $0x18] sm:$0xff] }
 0x861   :  { %v3738_v50 = vadd.s32 %v2352_v5, %v2350_v23 }
 0x862   :  { %v2379_v55 = vpop.xlane.xlu0 %2378 }
 0x863   :  { %v3745_v59 = vsel %vm4035_vm5, %v2510_v2, %v3738_v50  ;;  %v2380_v42 = vcvt.f32.s32 %v2379_v55  ;;  %vm2385_vm3 = vcmp.eq.s32.totalorder %v4138_v61, %v3738_v50 }
 0x864   :  { %v2405_v45 = vsel %vm2385_vm3, inf, %v3678_v30 }
 0x865   :  { %v3753_v3 = vadd.s32 %v2382_v60, %v2380_v42  ;;  %v2411_v17 = vsel %vm1260_vm10, %v2405_v45, inf }
 0x866   :  { %2412 = vmin.xlane.f32.xlu0 %v2411_v17 }
 0x867   :  { %v3761_v56 = vsel %vm4035_vm5, %v2512_v35, %v3753_v3  ;;  %vm2387_vm14 = vcmp.eq.s32.totalorder %v4138_v61, %v3753_v3  ;;  %v663_v3 = vsel %vm38_vm1, %v657_v31, 0.0 }
 0x868   :  { %v2407_v30 = vsel %vm2387_vm14, inf, %v3690_v43  ;;  %v635_v43 = vrot.slane %v3774_v7, %v2738_v20 }
 0x869   :  { %v2417_v18 = vsel %vm1260_vm10, %v2407_v30, inf }
 0x86a   :  { %2418 = vmin.xlane.f32.xlu0 %v2417_v18  ;;  %v636_v15 = vmul.f32 %v3781_v47, %v635_v43  ;;  %v638_v53 = vmul.f32 %v3785_v40, %v635_v43  ;;  %v639_v5 = vmul.f32 %v3797_v62, %v635_v43 }
 0x86c   :  { %v640_v8 = vsel %vm38_vm1, %v636_v15, 0.0  ;;  %v646_v20 = vsel %vm38_vm1, %v638_v53, 0.0  ;;  %v649_v51 = vsel %vm38_vm1, %v639_v5, 0.0  ;;  %v656_v5 = vmul.f32 %v3781_v47, %v655_v41 }
 0x8b3   :  { %v2410_v0 = vpop.xlane.xlu1 %2409 }
 0x8b4   :  { %vm2420_vm13 = vcmp.eq.f32.partialorder %v2404_v12, %v2410_v0 }
 0x8b5   :  { %v2424_v63 = vsel %vm2420_vm13, %v4138_v61, 16 }
 0x8b6   :  { %v2428_v27 = vsel %vm1260_vm10, %v2424_v63, 2147483647 }
 0x8b7   :  { %v2430_v24 = vshra.s32 %v2428_v27, 16  ;;  %v2416_v13 = vpop.xlane.xlu1 %2415  ;;  %v2429_v23 = vand.u32 65535, %v2428_v27 }
 0x8b8   :  { %vm2422_vm5 = vcmp.eq.f32.partialorder %v2406_v11, %v2416_v13  ;;  %v637_v11 = vmul.f32 %v3793_v38, %v635_v43 }
 0x8b9   :  { %v2426_v4 = vsel %vm2422_vm5, %v4138_v61, 16  ;;  %v2432_v39 = vcvt.s32.f32 %v2430_v24  ;;  %v2431_v60 = vcvt.s32.f32 %v2429_v23  ;;  %v660_v23 = vsel %vm38_vm1, %v656_v5, 0.0 }
 0x8ba   :  { %v2458_v48 = vsel %vm1260_vm10, %v2426_v4, 2147483647  ;;  %v643_v44 = vsel %vm38_vm1, %v637_v11, 0.0 }
 0x8bb   :  { %v2460_v37 = vshra.s32 %v2458_v48, 16  ;;  %2433 = vmin.xlane.f32.xlu1 %v2432_v39  ;;  %v2459_v2 = vand.u32 65535, %v2458_v48 }
 0x8bd   :  { %v2462_v49 = vcvt.s32.f32 %v2460_v37  ;;  %v2461_v17 = vcvt.s32.f32 %v2459_v2 }
 0x8bf   :  { %2463 = vmin.xlane.f32.xlu1 %v2462_v49 }
 0x8c3   :  { %641 = vadd.xlane.f32.xlu1 %v640_v8 }
 0x8c7   :  { %647 = vadd.xlane.f32.xlu1 %v646_v20 }
 0x8f3   :  { %v2413_v32 = vpop.xlane.xlu0 %2412 }
 0x8f4   :  { %vm2421_vm5 = vcmp.eq.f32.partialorder %v2405_v45, %v2413_v32 }
 0x8f5   :  { %v2425_v19 = vsel %vm2421_vm5, %v4138_v61, 16 }
 0x8f6   :  { %v2443_v46 = vsel %vm1260_vm10, %v2425_v19, 2147483647 }
 0x8f7   :  { %v2445_v28 = vshra.s32 %v2443_v46, 16  ;;  %v2419_v26 = vpop.xlane.xlu0 %2418 }
 0x8f8   :  { %vm2423_vm13 = vcmp.eq.f32.partialorder %v2407_v30, %v2419_v26  ;;  %v2444_v30 = vand.u32 65535, %v2443_v46 }
 0x8f9   :  { %v2427_v22 = vsel %vm2423_vm13, %v4138_v61, 16  ;;  %v2447_v33 = vcvt.s32.f32 %v2445_v28 }
 0x8fa   :  { %v2473_v12 = vsel %vm1260_vm10, %v2427_v22, 2147483647  ;;  %v2446_v63 = vcvt.s32.f32 %v2444_v30 }
 0x8fb   :  { %v2475_v16 = vshra.s32 %v2473_v12, 16  ;;  %2448 = vmin.xlane.f32.xlu0 %v2447_v33  ;;  %v2474_v18 = vand.u32 65535, %v2473_v12 }
 0x8fd   :  { %v2477_v9 = vcvt.s32.f32 %v2475_v16  ;;  %v2476_v43 = vcvt.s32.f32 %v2474_v18 }
 0x8ff   :  { %2478 = vmin.xlane.f32.xlu0 %v2477_v9 }
 0x903   :  { %644 = vadd.xlane.f32.xlu0 %v643_v44 }
 0x907   :  { %650 = vadd.xlane.f32.xlu0 %v649_v51 }
 0x948   :  { %v3801_v55 = vpop.xlane.xlu1 %2433 }
 0x949   :  { %vm2435_vm5 = vcmp.eq.f32.partialorder %v2432_v39, %v3801_v55  ;;  %v2440_v2 = vcvt.f32.s32 %v3801_v55 }
 0x94a   :  { %v2436_v42 = vsel %vm2435_vm5, %v2431_v60, inf }
 0x94b   :  { %2437 = vmin.xlane.f32.xlu1 %v2436_v42  ;;  %v2441_v60 = vshll.u32 %v2440_v2, 16 }
 0x94c   :  { %v3804_v45 = vpop.xlane.xlu1 %2463 }
 0x94d   :  { %vm2465_vm13 = vcmp.eq.f32.partialorder %v2462_v49, %v3804_v45  ;;  %v2470_v47 = vcvt.f32.s32 %v3804_v45 }
 0x94e   :  { %v2466_v35 = vsel %vm2465_vm13, %v2461_v17, inf }
 0x94f   :  { %2467 = vmin.xlane.f32.xlu1 %v2466_v35  ;;  %v2471_v35 = vshll.u32 %v2470_v47, 16 }
 0x950   :  { %v642_v24 = vpop.xlane.xlu1 %641 }
 0x951   :  { %v2151_v39 = vrot.slane %v642_v24, %v3080_v36 }
 0x954   :  { %v648_v37 = vpop.xlane.xlu1 %647 }
 0x955   :  { %v2160_v8 = vrot.slane %v648_v37, %v3080_v36 }
 0x988   :  { %v3807_v0 = vpop.xlane.xlu0 %2448 }
 0x989   :  { %vm2450_vm4 = vcmp.eq.f32.partialorder %v2447_v33, %v3807_v0 }
 0x98a   :  { %v2451_v27 = vsel %vm2450_vm4, %v2446_v63, inf  ;;  %vm4144_vm4 = vcmask 15360  }
 0x98b   :  { %2452 = vmin.xlane.f32.xlu0 %v2451_v27 }
 0x98c   :  { %v3810_v13 = vpop.xlane.xlu0 %2478 }
 0x98d   :  { %vm2480_vm5 = vcmp.eq.f32.partialorder %v2477_v9, %v3810_v13  ;;  %v2485_v37 = vcvt.f32.s32 %v3810_v13 }
 0x98e   :  { %v2481_v4 = vsel %vm2480_vm5, %v2476_v43, inf }
 0x98f   :  { %2482 = vmin.xlane.f32.xlu0 %v2481_v4 }
 0x990   :  { %v645_v48 = vpop.xlane.xlu0 %644 }
 0x991   :  { %v2155_v15 = vrot.slane %v645_v48, %v3083_v52 }
 0x993   :  { %v3816_v49 = vsel %vm940_vm2, %v2155_v15, %v2151_v39  ;;  %v2455_v39 = vcvt.f32.s32 %v3807_v0 }
 0x994   :  { %v651_v53 = vpop.xlane.xlu0 %650  ;;  %v2181_v20 = vsel %vm2141_vm9, %v3816_v49, 0.0  ;;  %v2180_v32 = vsel %vm2140_vm7, %v3816_v49, 0.0  ;;  %v2285_v22 = vsel %vm2281_vm11, %v3816_v49, 0.0  ;;  %v2284_v1 = vsel %vm2280_vm6, %v3816_v49, 0.0 }
 0x995   :  { %v2164_v19 = vrot.slane %v651_v53, %v3083_v52  ;;  %v2187_v46 = vsel %vm1260_vm10, %v2181_v20, 0.0  ;;  %v2184_v28 = vsel %vm1260_vm10, %v2180_v32, 0.0  ;;  %v2291_v33 = vsel %vm1260_vm10, %v2285_v22, 0.0 }
 0x996   :  { %2188 = vadd.xlane.f32.xlu0 %v2187_v46  ;;  %2185 = vadd.xlane.f32.xlu1 %v2184_v28  ;;  %v2288_v14 = vsel %vm1260_vm10, %v2284_v1, 0.0  ;;  %v2389_v11 = vsel %vm2385_vm3, %v3816_v49, 0.0  ;;  %vm4142_vm7 = vcmp.eq.s32.totalorder %v4138_v61, %v3721_v34  ;;  %vm2544_vm9 = vcmask 31744   ;;  %vm4148_vm3 = vmmov %vm4144_vm4 }
 0x997   :  { %v3831_v36 = vsel %vm940_vm2, %v2164_v19, %v2160_v8  ;;  %vm4141_vm2 = vcmp.eq.s32.totalorder %v4138_v61, %v3706_v10  ;;  %v2395_v9 = vsel %vm1260_vm10, %v2389_v11, 0.0  ;;  %v2456_v48 = vshll.u32 %v2455_v39, 16  ;;  %vm4150_vm5 = vmmov %vm4148_vm3 }
 0x998   :  { %v2183_v6 = vsel %vm2143_vm15, %v3831_v36, 0.0  ;;  %v2182_v58 = vsel %vm2142_vm8, %v3831_v36, 0.0  ;;  %v2287_v12 = vsel %vm2283_vm12, %v3831_v36, 0.0  ;;  %v2286_v25 = vsel %vm2282_vm0, %v3831_v36, 0.0 }
 0x999   :  { %v2193_v52 = vsel %vm1260_vm10, %v2183_v6, 0.0  ;;  %v2190_v26 = vsel %vm1260_vm10, %v2182_v58, 0.0  ;;  %v2297_v16 = vsel %vm1260_vm10, %v2287_v12, 0.0  ;;  %v2294_v21 = vsel %vm1260_vm10, %v2286_v25, 0.0 }
 0x99a   :  { %2194 = vadd.xlane.f32.xlu0 %v2193_v52  ;;  %2191 = vadd.xlane.f32.xlu1 %v2190_v26  ;;  %v2388_v57 = vsel %vm4141_vm2, %v3816_v49, 0.0  ;;  %v2391_v50 = vsel %vm2387_vm14, %v3831_v36, 0.0  ;;  %v2390_v10 = vsel %vm4142_vm7, %v3831_v36, 0.0  ;;  %vm2518_vm8 = vcmask 23552  }
 0x99b   :  { %v2392_v44 = vsel %vm1260_vm10, %v2388_v57, 0.0  ;;  %v2401_v7 = vsel %vm1260_vm10, %v2391_v50, 0.0  ;;  %v2398_v51 = vsel %vm1260_vm10, %v2390_v10, 0.0  ;;  %v2486_v53 = vshll.u32 %v2485_v37, 16 }
 0x99c   :  { %vm4143_vm12 = vcmask 7168   ;;  %v2539_v12 = vstv %s3974_s2 }
 0x99e   :  { %2292 = vadd.xlane.f32.xlu0 %v2291_v33  ;;  %2289 = vadd.xlane.f32.xlu1 %v2288_v14 }
 0x9a2   :  { %2298 = vadd.xlane.f32.xlu0 %v2297_v16  ;;  %2295 = vadd.xlane.f32.xlu1 %v2294_v21 }
 0x9a6   :  { %2396 = vadd.xlane.f32.xlu0 %v2395_v9  ;;  %2393 = vadd.xlane.f32.xlu1 %v2392_v44 }
 0x9aa   :  { %2402 = vadd.xlane.f32.xlu0 %v2401_v7  ;;  %2399 = vadd.xlane.f32.xlu1 %v2398_v51 }
 0x9ae   :  { %661 = vadd.xlane.f32.xlu1 %v660_v23  ;;  %664 = vadd.xlane.f32.xlu0 %v663_v3 }
 0x9d8   :  { %v2438_v34 = vpop.xlane.xlu1 %2437 }
 0x9d9   :  { %v2439_v42 = vcvt.f32.s32 %v2438_v34 }
 0x9db   :  { %v2442_v38 = vadd.s32 %v2441_v60, %v2439_v42 }
 0x9dc   :  { %v2468_v17 = vpop.xlane.xlu1 %2467 }
 0x9dd   :  { %v2519_v30 = vsel %vm2518_vm8, %v3713_v54, %v2442_v38  ;;  %v2469_v18 = vcvt.f32.s32 %v2468_v17  ;;  %vm2488_vm15 = vcmp.eq.s32.totalorder %v4138_v61, %v2442_v38  ;;  %v658_v54 = vmul.f32 %v3785_v40, %v655_v41 }
 0x9de   :  { %2589 = vst.msk [vmem:[%s3975_s3] sm:$0xff] %vm2544_vm9, %v2519_v30  ;;  %v2492_v55 = vsel %vm2488_vm15, %v3816_v49, 0.0 }
 0x9df   :  { %v2472_v45 = vadd.s32 %v2471_v35, %v2469_v18  ;;  %v2496_v63 = vsel %vm1260_vm10, %v2492_v55, 0.0  ;;  %v666_v4 = vsel %vm38_vm1, %v658_v54, 0.0 }
 0x9e0   :  { %2497 = vadd.xlane.f32.xlu1 %v2496_v63 }
 0x9e1   :  { %v2521_v27 = vsel %vm2518_vm8, %v3729_v29, %v2472_v45  ;;  %vm2490_vm6 = vcmp.eq.s32.totalorder %v4138_v61, %v2472_v45 }
 0x9e2   :  { %2591 = vst.msk [vmem:[%s3975_s3 + $0x10] sm:$0xff] %vm2544_vm9, %v2521_v27  ;;  %v2494_v24 = vsel %vm2490_vm6, %v3831_v36, 0.0 }
 0x9e3   :  { %v2502_v43 = vsel %vm1260_vm10, %v2494_v24, 0.0 }
 0x9e4   :  { %2503 = vadd.xlane.f32.xlu1 %v2502_v43 }
 0x9e8   :  { %667 = vadd.xlane.f32.xlu1 %v666_v4 }
 0xa18   :  { %v2453_v29 = vpop.xlane.xlu0 %2452 }
 0xa19   :  { %v2454_v40 = vcvt.f32.s32 %v2453_v29 }
 0xa1b   :  { %v2457_v15 = vadd.s32 %v2456_v48, %v2454_v40 }
 0xa1c   :  { %v2483_v8 = vpop.xlane.xlu0 %2482 }
 0xa1d   :  { %v2520_v20 = vsel %vm2518_vm8, %v3745_v59, %v2457_v15  ;;  %v2484_v32 = vcvt.f32.s32 %v2483_v8  ;;  %vm2489_vm0 = vcmp.eq.s32.totalorder %v4138_v61, %v2457_v15  ;;  %v659_v59 = vmul.f32 %v3797_v62, %v655_v41 }
 0xa1e   :  { %2590 = vst.msk [vmem:[%s3975_s3 + $0x8] sm:$0xff] %vm2544_vm9, %v2520_v20  ;;  %v2493_v0 = vsel %vm2489_vm0, %v3816_v49, 0.0 }
 0xa1f   :  { %v2487_v19 = vadd.s32 %v2486_v53, %v2484_v32  ;;  %v2499_v13 = vsel %vm1260_vm10, %v2493_v0, 0.0  ;;  %v669_v6 = vsel %vm38_vm1, %v659_v59, 0.0  ;;  %vm4145_vm1 = vmmov %vm4143_vm12 }
 0xa20   :  { %2500 = vadd.xlane.f32.xlu0 %v2499_v13  ;;  %vm4147_vm14 = vmmov %vm4145_vm1 }
 0xa21   :  { %v2522_v46 = vsel %vm2518_vm8, %v3761_v56, %v2487_v19  ;;  %vm2491_vm11 = vcmp.eq.s32.totalorder %v4138_v61, %v2487_v19  ;;  %vm4149_vm13 = vmmov %vm4145_vm1 }
 0xa22   :  { %2592 = vst.msk [vmem:[%s3975_s3 + $0x18] sm:$0xff] %vm2544_vm9, %v2522_v46  ;;  %v2495_v28 = vsel %vm2491_vm11, %v3831_v36, 0.0 }
 0xa23   :  { %v2505_v49 = vsel %vm1260_vm10, %v2495_v28, 0.0  ;;  %v2186_v58 = vpop.xlane.xlu1 %2185  ;;  %vm4146_vm10 = vmmov %vm4144_vm4  ;;  %v2189_v31 = vpop.xlane.xlu0 %2188 }
 0xa24   :  { %2506 = vadd.xlane.f32.xlu0 %v2505_v49 }
 0xa27   :  { %v2192_v52 = vpop.xlane.xlu1 %2191  ;;  %v2195_v7 = vpop.xlane.xlu0 %2194 }
 0xa28   :  { %670 = vadd.xlane.f32.xlu0 %v669_v6 }
 0xa2b   :  { %v2290_v56 = vpop.xlane.xlu1 %2289  ;;  %v2293_v51 = vpop.xlane.xlu0 %2292 }
 0xa2c   :  { %v2523_v1 = vsel %vm4143_vm12, %v2186_v58, %v2290_v56  ;;  %v2524_v60 = vsel %vm4147_vm14, %v2189_v31, %v2293_v51 }
 0xa2f   :  { %v2296_v26 = vpop.xlane.xlu1 %2295  ;;  %v2299_v23 = vpop.xlane.xlu0 %2298 }
 0xa30   :  { %v2525_v11 = vsel %vm4145_vm1, %v2192_v52, %v2296_v26  ;;  %v2526_v18 = vsel %vm4149_vm13, %v2195_v7, %v2299_v23 }
 0xa33   :  { %v2394_v61 = vpop.xlane.xlu1 %2393  ;;  %v2397_v3 = vpop.xlane.xlu0 %2396 }
 0xa34   :  { %v2527_v33 = vsel %vm4144_vm4, %v2523_v1, %v2394_v61  ;;  %v2528_v47 = vsel %vm4148_vm3, %v2524_v60, %v2397_v3 }
 0xa37   :  { %v2400_v22 = vpop.xlane.xlu1 %2399  ;;  %v2403_v2 = vpop.xlane.xlu0 %2402 }
 0xa38   :  { %v2529_v41 = vsel %vm4146_vm10, %v2525_v11, %v2400_v22  ;;  %v2530_v45 = vsel %vm4150_vm5, %v2526_v18, %v2403_v2 }
 0xa3b   :  { %v662_v62 = vpop.xlane.xlu1 %661  ;;  %v665_v34 = vpop.xlane.xlu0 %664 }
 0xa6d   :  { %v2498_v14 = vpop.xlane.xlu1 %2497 }
 0xa6e   :  { %v2531_v36 = vsel %vm2518_vm8, %v2527_v33, %v2498_v14 }
 0xa6f   :  { %v2535_v25 = vadd.f32 %v2531_v36, %v662_v62 }
 0xa71   :  { %v2504_v16 = vpop.xlane.xlu1 %2503  ;;  %v2540_v21 = vadd.f32 %v2539_v12, %v2535_v25 }
 0xa72   :  { %v2533_v9 = vsel %vm2518_vm8, %v2529_v41, %v2504_v16 }
 0xa73   :  { %v2545_v57 = vsel %vm2544_vm9, %v2540_v21, -inf }
 0xa74   :  { %2546 = vmax.xlane.f32.xlu1 %v2545_v57 }
 0xa75   :  { %v668_v44 = vpop.xlane.xlu1 %667 }
 0xa76   :  { %v2537_v50 = vadd.f32 %v2533_v9, %v668_v44 }
 0xa78   :  { %v2542_v10 = vadd.f32 %v2539_v12, %v2537_v50 }
 0xa7a   :  { %v2551_v5 = vsel %vm2544_vm9, %v2542_v10, -inf }
 0xa7b   :  { %2552 = vmax.xlane.f32.xlu1 %v2551_v5 }
 0xaad   :  { %v2501_v42 = vpop.xlane.xlu0 %2500 }
 0xaae   :  { %v2532_v38 = vsel %vm2518_vm8, %v2528_v47, %v2501_v42 }
 0xaaf   :  { %v2536_v17 = vadd.f32 %v2532_v38, %v665_v34 }
 0xab1   :  { %v2507_v35 = vpop.xlane.xlu0 %2506  ;;  %v2541_v30 = vadd.f32 %v2539_v12, %v2536_v17 }
 0xab2   :  { %v2534_v63 = vsel %vm2518_vm8, %v2530_v45, %v2507_v35 }
 0xab3   :  { %v2548_v55 = vsel %vm2544_vm9, %v2541_v30, -inf }
 0xab4   :  { %2549 = vmax.xlane.f32.xlu0 %v2548_v55 }
 0xab5   :  { %v671_v27 = vpop.xlane.xlu0 %670 }
 0xab6   :  { %v2538_v54 = vadd.f32 %v2534_v63, %v671_v27 }
 0xab8   :  { %v2543_v24 = vadd.f32 %v2539_v12, %v2538_v54 }
 0xaba   :  { %v2554_v43 = vsel %vm2544_vm9, %v2543_v24, -inf }
 0xabb   :  { %2555 = vmax.xlane.f32.xlu0 %v2554_v43 }
 0xb01   :  { %v2547_v4 = vpop.xlane.xlu1 %2546 }
 0xb02   :  { %v2557_v39 = vsub.f32 %v2540_v21, %v2547_v4 }
 0xb04   :  { %v2561_v29 = vmul.f32 1.442695, %v2557_v39 }
 0xb06   :  { %2636 = vpow2.f32 %v2561_v29 }
 0xb08   :  { %v2553_v48 = vpop.xlane.xlu1 %2552 }
 0xb09   :  { %v2559_v37 = vsub.f32 %v2542_v10, %v2553_v48 }
 0xb0b   :  { %v2565_v40 = vmul.f32 1.442695, %v2559_v37 }
 0xb0d   :  { %2638 = vpow2.f32 %v2565_v40 }
 0xb10   :  { %v2637_v15 = vpop.eup %2636 }
 0xb11   :  { %v2569_v8 = vsel %vm2544_vm9, %v2637_v15, 0.0 }
 0xb12   :  { %2570 = vadd.xlane.f32.xlu1 %v2569_v8 }
 0xb17   :  { %v2639_v53 = vpop.eup %2638 }
 0xb18   :  { %v2575_v20 = vsel %vm2544_vm9, %v2639_v53, 0.0 }
 0xb19   :  { %2576 = vadd.xlane.f32.xlu1 %v2575_v20 }
 0xb41   :  { %v2550_v32 = vpop.xlane.xlu0 %2549 }
 0xb42   :  { %v2558_v0 = vsub.f32 %v2541_v30, %v2550_v32 }
 0xb44   :  { %v2563_v19 = vmul.f32 1.442695, %v2558_v0 }
 0xb46   :  { %2640 = vpow2.f32 %v2563_v19 }
 0xb48   :  { %v2556_v13 = vpop.xlane.xlu0 %2555 }
 0xb49   :  { %v2560_v46 = vsub.f32 %v2543_v24, %v2556_v13 }
 0xb4b   :  { %v2567_v59 = vmul.f32 1.442695, %v2560_v46 }
 0xb4d   :  { %2642 = vpow2.f32 %v2567_v59 }
 0xb50   :  { %v2641_v28 = vpop.eup %2640 }
 0xb51   :  { %v2572_v49 = vsel %vm2544_vm9, %v2641_v28, 0.0 }
 0xb52   :  { %2573 = vadd.xlane.f32.xlu0 %v2572_v49 }
 0xb57   :  { %v2643_v6 = vpop.eup %2642 }
 0xb58   :  { %v2578_v58 = vsel %vm2544_vm9, %v2643_v6, 0.0 }
 0xb59   :  { %2579 = vadd.xlane.f32.xlu0 %v2578_v58 }
 0xb9f   :  { %v2571_v52 = vpop.xlane.xlu1 %2570 }
 0xba0   :  { %2644 = vrcp.f32 %v2571_v52 }
 0xba6   :  { %v2577_v56 = vpop.xlane.xlu1 %2576 }
 0xba7   :  { %2646 = vrcp.f32 %v2577_v56 }
 0xbaa   :  { %v2645_v26 = vpop.eup %2644 }
 0xbab   :  { %v2582_v61 = vmul.f32 %v2645_v26, %v2637_v15 }
 0xbad   :  { %v2593_v22 = vadd.f32 0.5, %v2582_v61 }
 0xbaf   :  { %2597 = vst.msk [vmem:[%s3976_s4] sm:$0xff] %vm2544_vm9, %v2593_v22 }
 0xbb1   :  { %v2647_v62 = vpop.eup %2646 }
 0xbb2   :  { %v2586_v1 = vmul.f32 %v2647_v62, %v2639_v53 }
 0xbb4   :  { %v2595_v33 = vadd.f32 0.5, %v2586_v1 }
 0xbb6   :  { %2599 = vst.msk [vmem:[%s3976_s4 + $0x10] sm:$0xff] %vm2544_vm9, %v2595_v33 }
 0xbdf   :  { %v2574_v14 = vpop.xlane.xlu0 %2573 }
 0xbe0   :  { %2648 = vrcp.f32 %v2574_v14 }
 0xbe6   :  { %v2580_v36 = vpop.xlane.xlu0 %2579 }
 0xbe7   :  { %2650 = vrcp.f32 %v2580_v36 }
 0xbea   :  { %v2649_v12 = vpop.eup %2648 }
 0xbeb   :  { %v2584_v25 = vmul.f32 %v2649_v12, %v2641_v28 }
 0xbed   :  { %v2594_v16 = vadd.f32 0.5, %v2584_v25 }
 0xbef   :  { %2598 = vst.msk [vmem:[%s3976_s4 + $0x8] sm:$0xff] %vm2544_vm9, %v2594_v16 }
 0xbf1   :  { %v2651_v21 = vpop.eup %2650 }
 0xbf2   :  { %v2588_v11 = vmul.f32 %v2651_v21, %v2643_v6 }
 0xbf4   :  { %v2596_v57 = vadd.f32 0.5, %v2588_v11 }
 0xbf6   :  { %2600 = vst.msk [vmem:[%s3976_s4 + $0x18] sm:$0xff] %vm2544_vm9, %v2596_v57 }
 0xbf7   :  { %2609 = vsyncpa [#allocation4], 1 }

</bundles_post_ra>
